<compile_context>
chip_gen: v7x
topology: tpu7x:2x2x1
jax: 0.10.0
libtpu: 0.0.40
codegen_flags: <defaults>
</compile_context>

<pallas_src>
import jax
import jax.numpy as jnp
from jax.experimental import pallas as pl
from jax.experimental.pallas import tpu as pltpu

BN_EPS = 1e-5
LANE = 128
SUBLANE = 8


# ----------------------------------------------------------------------------
# Parameter construction (deterministic, mirrors the PyTorch module's shapes).
# ----------------------------------------------------------------------------
def init_params(key, in_dim, fcn_dims, out_dim):
    """Creates params with the same shapes nn.Linear / nn.BatchNorm1d would have."""
    dim_list = [in_dim] + list(fcn_dims)
    blocks = []
    for i in range(len(dim_list) - 1):
        d_in, d_out = dim_list[i], dim_list[i + 1]
        key, *ks = jax.random.split(key, 9)
        blk = dict(
            w1=jax.random.normal(ks[0], (d_out, d_in), jnp.float32) * 0.1,
            b1=jax.random.normal(ks[1], (d_out,), jnp.float32) * 0.1,
            g1=1.0 + 0.1 * jax.random.normal(ks[2], (d_out,), jnp.float32),
            be1=0.1 * jax.random.normal(ks[3], (d_out,), jnp.float32),
            rm1=0.1 * jax.random.normal(ks[4], (d_out,), jnp.float32),
            rv1=jax.random.uniform(ks[5], (d_out,), jnp.float32, 0.5, 1.5),
            w2=jax.random.normal(ks[6], (d_out, d_out), jnp.float32) * 0.1,
            b2=jax.random.normal(ks[7], (d_out,), jnp.float32) * 0.1,
        )
        key, *ks = jax.random.split(key, 5)
        blk.update(
            g2=1.0 + 0.1 * jax.random.normal(ks[0], (d_out,), jnp.float32),
            be2=0.1 * jax.random.normal(ks[1], (d_out,), jnp.float32),
            rm2=0.1 * jax.random.normal(ks[2], (d_out,), jnp.float32),
            rv2=jax.random.uniform(ks[3], (d_out,), jnp.float32, 0.5, 1.5),
        )
        blocks.append(blk)
    key, k1, k2 = jax.random.split(key, 3)
    proj_w = jax.random.normal(k1, (out_dim, dim_list[-1]), jnp.float32) * 0.1
    proj_b = jax.random.normal(k2, (out_dim,), jnp.float32) * 0.1
    return dict(blocks=blocks, proj_w=proj_w, proj_b=proj_b)


# ----------------------------------------------------------------------------
# Wrapper-side helpers (folding, padding, tiling, VMEM budgeting).
# ----------------------------------------------------------------------------
def _round_up(n, m):
    return (n + m - 1) // m * m


def _pad2d(a, rows, cols):
    return jnp.pad(a, ((0, rows - a.shape[0]), (0, cols - a.shape[1])))


def _fold_linear_bn(w, b, gamma, beta, rmean, rvar):
    """Fold Linear bias + eval-mode BatchNorm1d into (W_fold, shift).

    y = (x @ W.T + b - rmean) * scale + beta  ==  x @ (W.T * scale) + shift
    """
    scale = gamma / jnp.sqrt(rvar + BN_EPS)            # (D,)
    shift = beta - rmean * scale + b * scale           # (D,)
    w_fold = jnp.transpose(w) * scale[None, :]         # (in, out), BN scale folded in
    return w_fold, shift.reshape(1, -1)


def _vmem_cap_bytes():
    """Per-chip VMEM capacity (128 MiB v5e/v6e, 64 MiB v7x) minus 8 MiB headroom."""
    try:
        cap = int(pltpu.get_tpu_info().vmem_capacity_bytes)
    except Exception:
        cap = 64 << 20                       # conservative (v7x-sized) fallback
    return max(cap - (8 << 20), 16 << 20)


def _choose_tile_b(b_pad):
    """Pick the batch tile FIRST; the caller pads the batch up to a multiple of it.

    - b_pad < 256   : one fat grid step (grid overhead ~0.35us/step dominates).
    - 256..1023     : exactly two steps so v7x's second TensorCore gets work (>=128 M).
    - >= 1024       : 512-row steps, keeping M >= 256 for the 256-wide v6e/v7x MXU.
    """
    if b_pad < 256:
        return b_pad
    if b_pad < 1024:
        return _round_up(b_pad // 2, SUBLANE)
    return 512


def _vmem_budget(tile_b, param_bytes, param_buffers, in_p, hid_p, out_p):
    """Conservative VMEM estimate: params, pipelined I/O tiles, live f32 intermediates."""
    max_w = max([in_p, out_p] + list(hid_p))
    act_io = 2 * tile_b * (in_p + out_p) * 4        # double-buffered in/out tiles
    act_live = 6 * tile_b * max_w * 4               # x, h, r, res_outer + casts (f32)
    return param_buffers * param_bytes + act_io + act_live + (4 << 20)


# ----------------------------------------------------------------------------
# Pallas kernel: whole FCN forward on one fat batch tile.
# ----------------------------------------------------------------------------
def _make_fcn_kernel(num_blocks, outer_residual_flags, compute_dtype=jnp.bfloat16):
    def kernel(x_ref, *refs):
        o_ref = refs[-1]
        params = refs[:-1]
        x = x_ref[...].astype(jnp.float32)

        def lin_bn(h, w_ref, sh_ref):
            # BN scale pre-folded into weight columns -> matmul + single f32 add.
            y = jnp.dot(h.astype(compute_dtype), w_ref[...],
                        preferred_element_type=jnp.float32)
            return y + sh_ref[...]

        idx = 0
        for blk in range(num_blocks):
            w1, sh1, w2, sh2 = params[idx:idx + 4]
            idx += 4
            res_outer = x
            h = lin_bn(x, w1, sh1)          # fc1 + bn1 (folded)
            r = h                           # FcnBlock residual (post-bn1, pre-ReLU)
            h = jnp.maximum(h, 0.0)         # ReLU; dropout1 = identity at eval
            h = lin_bn(h, w2, sh2)          # fc2 + bn2 (folded); dropout2 = identity
            h = h + r                       # x += residual (FcnBlock)
            if outer_residual_flags[blk]:   # encoder-level residual (dim == in_dim)
                h = h + res_outer
            x = h
        wp, bp = params[idx], params[idx + 1]
        y = jnp.dot(x.astype(compute_dtype), wp[...],
                    preferred_element_type=jnp.float32) + bp[...]
        o_ref[...] = y.astype(o_ref.dtype)

    return kernel


def motion_encoder_forward(x, params, in_dim, fcn_dims, out_dim,
                           tile_b=None, weight_dtype=jnp.bfloat16):
    """Runs the MotionEncoder forward pass (eval mode) as a single Pallas kernel."""
    B, D_in = x.shape
    assert D_in == in_dim
    num_blocks = len(fcn_dims)
    dim_list = [in_dim] + list(fcn_dims)

    # Encoder residual rule: applied when block's out dim == original in_dim.
    outer_flags = []
    for prev_d, d in zip(dim_list[:-1], dim_list[1:]):
        flag = int(d) == int(in_dim)
        if flag and int(prev_d) != int(d):
            raise ValueError("Outer residual requires block in/out widths to match")
        outer_flags.append(flag)

    # Lane-dense padded widths (multiples of 128).
    in_p = _round_up(in_dim, LANE)
    hid_p = [_round_up(d, LANE) for d in fcn_dims]
    out_p = _round_up(out_dim, LANE)

    # Fold + pad + cast params once in the wrapper.
    flat_params = []
    prev_p = in_p
    for blk, d_p in zip(params["blocks"], hid_p):
        w1, sh1 = _fold_linear_bn(blk["w1"], blk["b1"], blk["g1"], blk["be1"],
                                  blk["rm1"], blk["rv1"])
        w2, sh2 = _fold_linear_bn(blk["w2"], blk["b2"], blk["g2"], blk["be2"],
                                  blk["rm2"], blk["rv2"])
        flat_params += [
            _pad2d(w1, prev_p, d_p).astype(weight_dtype),   # (prev_p, d_p)  bf16
            _pad2d(sh1, 1, d_p),                            # (1, d_p)       f32
            _pad2d(w2, d_p, d_p).astype(weight_dtype),      # (d_p, d_p)     bf16
            _pad2d(sh2, 1, d_p),                            # (1, d_p)       f32
        ]
        prev_p = d_p
    flat_params += [
        _pad2d(jnp.transpose(params["proj_w"]), prev_p, out_p).astype(weight_dtype),
        _pad2d(params["proj_b"].reshape(1, -1), 1, out_p),
    ]
    param_bytes = sum(int(p.size) * p.dtype.itemsize for p in flat_params)

    # Batch tiling: pick tile_b first, then pad the batch to a multiple of it, then
    # shrink tile_b if the conservative VMEM estimate exceeds the per-chip cap.
    cap = _vmem_cap_bytes()
    b_pad = _round_up(max(B, SUBLANE), SUBLANE)
    if tile_b is None:
        tile_b = _choose_tile_b(b_pad)
    tile_b = _round_up(min(tile_b, b_pad if b_pad >= SUBLANE else SUBLANE), SUBLANE)
    while tile_b > 64 and _vmem_budget(tile_b, param_bytes, 2, in_p, hid_p, out_p) > cap:
        tile_b = _round_up(tile_b // 2, SUBLANE)
    b_pad = _round_up(b_pad, tile_b)
    grid_b = b_pad // tile_b

    x_p = jnp.pad(x, ((0, b_pad - B), (0, in_p - in_dim)))

    # Conservative budget (assumes double-buffered params so the fallback path fits too).
    budget = _vmem_budget(tile_b, param_bytes, 2, in_p, hid_p, out_p)
    vmem_limit = int(min(max(budget, 32 << 20), cap))

    # Advisory cost estimate so XLA can schedule surrounding ops around the call.
    flops = 0
    prev = in_p
    for d_p in hid_p:
        flops += 2 * b_pad * prev * d_p + 2 * b_pad * d_p * d_p
        prev = d_p
    flops += 2 * b_pad * prev * out_p
    cost = pl.CostEstimate(flops=int(flops), transcendentals=0,
                           bytes_accessed=int(param_bytes + b_pad * (in_p + out_p) * 4))

    kernel = _make_fcn_kernel(num_blocks, outer_flags, compute_dtype=weight_dtype)
    out_shape = jax.ShapeDtypeStruct((b_pad, out_p), x.dtype)
    cparams = pltpu.CompilerParams(dimension_semantics=("parallel",),
                                   vmem_limit_bytes=vmem_limit)

    def _param_spec(shape, ndim, single_buffer):
        idx_map = lambda i, _nd=ndim: (0,) * _nd        # bind ndim now (no late binding)
        if single_buffer:
            # Grid-invariant tile: double-buffering it is pure VMEM waste.
            return pl.BlockSpec(shape, idx_map, pipeline_mode=pl.Buffered(1))
        return pl.BlockSpec(shape, idx_map)

    def _call(single_buffer_params):
        in_specs = [pl.BlockSpec((tile_b, in_p), lambda i: (i, 0))]
        in_specs += [_param_spec(p.shape, p.ndim, single_buffer_params)
                     for p in flat_params]
        out_spec = pl.BlockSpec((tile_b, out_p), lambda i: (i, 0))
        return pl.pallas_call(
            kernel,
            out_shape=out_shape,
            grid=(grid_b,),
            in_specs=in_specs,
            out_specs=out_spec,
            compiler_params=cparams,
            cost_estimate=cost,
        )(x_p, *flat_params)

    try:
        out_padded = jax.block_until_ready(_call(True))
    except Exception:
        # Fallback: default double-buffered params if Buffered(1) is unsupported here.
        out_padded = jax.block_until_ready(_call(False))

    return out_padded[:B, :out_dim]


# ----------------------------------------------------------------------------
# Pure-JAX reference (mirrors the PyTorch forward, eval mode, full f32).
# ----------------------------------------------------------------------------
def ref_forward(x, params, in_dim, fcn_dims):
    h = x
    for blk, dim in zip(params["blocks"], fcn_dims):
        res = h
        y = h @ blk["w1"].T + blk["b1"]
        y = (y - blk["rm1"]) / jnp.sqrt(blk["rv1"] + BN_EPS) * blk["g1"] + blk["be1"]
        r = y
        y = jnp.maximum(y, 0.0)
        y = y @ blk["w2"].T + blk["b2"]
        y = (y - blk["rm2"]) / jnp.sqrt(blk["rv2"] + BN_EPS) * blk["g2"] + blk["be2"]
        y = y + r
        if dim == in_dim:
            y = y + res
        h = y
    return h @ params["proj_w"].T + params["proj_b"]


if __name__ == "__main__":
    # Small config consistent with the module: in_dim=32, fcn_dims=[32, 32],
    # out_dim=16, dropout=0.1 (identity at inference).
    in_dim, fcn_dims, out_dim = 32, [32, 32], 16
    batch = 16

    key = jax.random.PRNGKey(0)
    kp, kx = jax.random.split(key)
    params = init_params(kp, in_dim, fcn_dims, out_dim)
    x = jax.random.normal(kx, (batch, in_dim), jnp.float32)

    out = motion_encoder_forward(x, params, in_dim, fcn_dims, out_dim)
    out = jax.block_until_ready(out)

    ref = ref_forward(x, params, in_dim, fcn_dims)
    assert out.shape == (batch, out_dim)
    # bf16 weight quantization on the MXU path -> loosened tolerance vs the full-f32
    # reference (accumulation and inter-layer activations stay f32).
    assert jnp.allclose(out, ref, rtol=3e-2, atol=3e-2), "mismatch vs JAX reference"

    print("KERNEL_OK")
</pallas_src>

<mosaic_0001>
module attributes {stable_mosaic.version = 11 : i64} {
  func.func @kernel(%arg0: i32, %arg1: memref<16x128xf32, #tpu.memory_space<vmem>>, %arg2: memref<128x128xbf16, #tpu.memory_space<vmem>>, %arg3: memref<1x128xf32, #tpu.memory_space<vmem>>, %arg4: memref<128x128xbf16, #tpu.memory_space<vmem>>, %arg5: memref<1x128xf32, #tpu.memory_space<vmem>>, %arg6: memref<128x128xbf16, #tpu.memory_space<vmem>>, %arg7: memref<1x128xf32, #tpu.memory_space<vmem>>, %arg8: memref<128x128xbf16, #tpu.memory_space<vmem>>, %arg9: memref<1x128xf32, #tpu.memory_space<vmem>>, %arg10: memref<128x128xbf16, #tpu.memory_space<vmem>>, %arg11: memref<1x128xf32, #tpu.memory_space<vmem>>, %arg12: memref<16x128xf32, #tpu.memory_space<vmem>>) attributes {dimension_semantics = [#tpu.dimension_semantics<parallel>], iteration_bounds = array<i64: 1>, scalar_prefetch = 0 : i64, scratch_operands = 0 : i64, tpu.core_type = #tpu.core_type<tc>, window_params = [{transform_indices = @transform_0, window_bounds = array<i64: 16, 128>}, {pipeline_mode = #tpu.pipeline_mode<synchronous>, transform_indices = @transform_1, window_bounds = array<i64: 128, 128>}, {pipeline_mode = #tpu.pipeline_mode<synchronous>, transform_indices = @transform_2, window_bounds = array<i64: 1, 128>}, {pipeline_mode = #tpu.pipeline_mode<synchronous>, transform_indices = @transform_3, window_bounds = array<i64: 128, 128>}, {pipeline_mode = #tpu.pipeline_mode<synchronous>, transform_indices = @transform_4, window_bounds = array<i64: 1, 128>}, {pipeline_mode = #tpu.pipeline_mode<synchronous>, transform_indices = @transform_5, window_bounds = array<i64: 128, 128>}, {pipeline_mode = #tpu.pipeline_mode<synchronous>, transform_indices = @transform_6, window_bounds = array<i64: 1, 128>}, {pipeline_mode = #tpu.pipeline_mode<synchronous>, transform_indices = @transform_7, window_bounds = array<i64: 128, 128>}, {pipeline_mode = #tpu.pipeline_mode<synchronous>, transform_indices = @transform_8, window_bounds = array<i64: 1, 128>}, {pipeline_mode = #tpu.pipeline_mode<synchronous>, transform_indices = @transform_9, window_bounds = array<i64: 128, 128>}, {pipeline_mode = #tpu.pipeline_mode<synchronous>, transform_indices = @transform_10, window_bounds = array<i64: 1, 128>}, {transform_indices = @transform_11, window_bounds = array<i64: 16, 128>}]} {
    %c0 = arith.constant 0 : index
    %c0_0 = arith.constant 0 : index
    %0 = vector.load %arg1[%c0, %c0_0] : memref<16x128xf32, #tpu.memory_space<vmem>>, vector<16x128xf32>
    %1 = arith.truncf %0 : vector<16x128xf32> to vector<16x128xbf16>
    %c0_1 = arith.constant 0 : index
    %c0_2 = arith.constant 0 : index
    %2 = vector.load %arg2[%c0_1, %c0_2] : memref<128x128xbf16, #tpu.memory_space<vmem>>, vector<128x128xbf16>
    %cst = arith.constant dense<0.000000e+00> : vector<16x128xf32>
    %3 = tpu.matmul %1, %2, %cst {dimension_numbers = #tpu.dot_dimension_numbers<[1], [0], [0], [1], [0, 0, 1, 1], [], []>} : vector<16x128xbf16>, vector<128x128xbf16>, vector<16x128xf32> -> vector<16x128xf32>
    %c0_3 = arith.constant 0 : index
    %c0_4 = arith.constant 0 : index
    %4 = vector.load %arg3[%c0_3, %c0_4] : memref<1x128xf32, #tpu.memory_space<vmem>>, vector<1x128xf32>
    %5 = vector.broadcast %4 : vector<1x128xf32> to vector<16x128xf32>
    %6 = arith.addf %3, %5 : vector<16x128xf32>
    %cst_5 = arith.constant 0.000000e+00 : f32
    %7 = vector.broadcast %cst_5 : f32 to vector<16x128xf32>
    %8 = arith.maximumf %6, %7 : vector<16x128xf32>
    %9 = arith.truncf %8 : vector<16x128xf32> to vector<16x128xbf16>
    %c0_6 = arith.constant 0 : index
    %c0_7 = arith.constant 0 : index
    %10 = vector.load %arg4[%c0_6, %c0_7] : memref<128x128xbf16, #tpu.memory_space<vmem>>, vector<128x128xbf16>
    %cst_8 = arith.constant dense<0.000000e+00> : vector<16x128xf32>
    %11 = tpu.matmul %9, %10, %cst_8 {dimension_numbers = #tpu.dot_dimension_numbers<[1], [0], [0], [1], [0, 0, 1, 1], [], []>} : vector<16x128xbf16>, vector<128x128xbf16>, vector<16x128xf32> -> vector<16x128xf32>
    %c0_9 = arith.constant 0 : index
    %c0_10 = arith.constant 0 : index
    %12 = vector.load %arg5[%c0_9, %c0_10] : memref<1x128xf32, #tpu.memory_space<vmem>>, vector<1x128xf32>
    %13 = vector.broadcast %12 : vector<1x128xf32> to vector<16x128xf32>
    %14 = arith.addf %11, %13 : vector<16x128xf32>
    %15 = arith.addf %14, %6 : vector<16x128xf32>
    %16 = arith.addf %15, %0 : vector<16x128xf32>
    %17 = arith.truncf %16 : vector<16x128xf32> to vector<16x128xbf16>
    %c0_11 = arith.constant 0 : index
    %c0_12 = arith.constant 0 : index
    %18 = vector.load %arg6[%c0_11, %c0_12] : memref<128x128xbf16, #tpu.memory_space<vmem>>, vector<128x128xbf16>
    %cst_13 = arith.constant dense<0.000000e+00> : vector<16x128xf32>
    %19 = tpu.matmul %17, %18, %cst_13 {dimension_numbers = #tpu.dot_dimension_numbers<[1], [0], [0], [1], [0, 0, 1, 1], [], []>} : vector<16x128xbf16>, vector<128x128xbf16>, vector<16x128xf32> -> vector<16x128xf32>
    %c0_14 = arith.constant 0 : index
    %c0_15 = arith.constant 0 : index
    %20 = vector.load %arg7[%c0_14, %c0_15] : memref<1x128xf32, #tpu.memory_space<vmem>>, vector<1x128xf32>
    %21 = vector.broadcast %20 : vector<1x128xf32> to vector<16x128xf32>
    %22 = arith.addf %19, %21 : vector<16x128xf32>
    %cst_16 = arith.constant 0.000000e+00 : f32
    %23 = vector.broadcast %cst_16 : f32 to vector<16x128xf32>
    %24 = arith.maximumf %22, %23 : vector<16x128xf32>
    %25 = arith.truncf %24 : vector<16x128xf32> to vector<16x128xbf16>
    %c0_17 = arith.constant 0 : index
    %c0_18 = arith.constant 0 : index
    %26 = vector.load %arg8[%c0_17, %c0_18] : memref<128x128xbf16, #tpu.memory_space<vmem>>, vector<128x128xbf16>
    %cst_19 = arith.constant dense<0.000000e+00> : vector<16x128xf32>
    %27 = tpu.matmul %25, %26, %cst_19 {dimension_numbers = #tpu.dot_dimension_numbers<[1], [0], [0], [1], [0, 0, 1, 1], [], []>} : vector<16x128xbf16>, vector<128x128xbf16>, vector<16x128xf32> -> vector<16x128xf32>
    %c0_20 = arith.constant 0 : index
    %c0_21 = arith.constant 0 : index
    %28 = vector.load %arg9[%c0_20, %c0_21] : memref<1x128xf32, #tpu.memory_space<vmem>>, vector<1x128xf32>
    %29 = vector.broadcast %28 : vector<1x128xf32> to vector<16x128xf32>
    %30 = arith.addf %27, %29 : vector<16x128xf32>
    %31 = arith.addf %30, %22 : vector<16x128xf32>
    %32 = arith.addf %31, %16 : vector<16x128xf32>
    %33 = arith.truncf %32 : vector<16x128xf32> to vector<16x128xbf16>
    %c0_22 = arith.constant 0 : index
    %c0_23 = arith.constant 0 : index
    %34 = vector.load %arg10[%c0_22, %c0_23] : memref<128x128xbf16, #tpu.memory_space<vmem>>, vector<128x128xbf16>
    %cst_24 = arith.constant dense<0.000000e+00> : vector<16x128xf32>
    %35 = tpu.matmul %33, %34, %cst_24 {dimension_numbers = #tpu.dot_dimension_numbers<[1], [0], [0], [1], [0, 0, 1, 1], [], []>} : vector<16x128xbf16>, vector<128x128xbf16>, vector<16x128xf32> -> vector<16x128xf32>
    %c0_25 = arith.constant 0 : index
    %c0_26 = arith.constant 0 : index
    %36 = vector.load %arg11[%c0_25, %c0_26] : memref<1x128xf32, #tpu.memory_space<vmem>>, vector<1x128xf32>
    %37 = vector.broadcast %36 : vector<1x128xf32> to vector<16x128xf32>
    %38 = arith.addf %35, %37 : vector<16x128xf32>
    %c0_27 = arith.constant 0 : index
    %c0_28 = arith.constant 0 : index
    %39 = vector.load %arg12[%c0_27, %c0_28] : memref<16x128xf32, #tpu.memory_space<vmem>>, vector<16x128xf32>
    tpu.vector_store %arg12[%c0_27, %c0_28], %38 {strides = array<i32>} : memref<16x128xf32, #tpu.memory_space<vmem>>, vector<16x128xf32>,
    return
  }
  func.func @transform_0(%arg0: i32) -> (i32, i32) {
    %c0_i32 = arith.constant 0 : i32
    %c0_i32_0 = arith.constant 0 : i32
    return %arg0, %c0_i32 : i32, i32
  }
  func.func @transform_1(%arg0: i32) -> (i32, i32) {
    %c0_i32 = arith.constant 0 : i32
    %c0_i32_0 = arith.constant 0 : i32
    %c0_i32_1 = arith.constant 0 : i32
    return %c0_i32, %c0_i32_0 : i32, i32
  }
  func.func @transform_2(%arg0: i32) -> (i32, i32) {
    %c0_i32 = arith.constant 0 : i32
    %c0_i32_0 = arith.constant 0 : i32
    %c0_i32_1 = arith.constant 0 : i32
    return %c0_i32, %c0_i32_0 : i32, i32
  }
  func.func @transform_3(%arg0: i32) -> (i32, i32) {
    %c0_i32 = arith.constant 0 : i32
    %c0_i32_0 = arith.constant 0 : i32
    %c0_i32_1 = arith.constant 0 : i32
    return %c0_i32, %c0_i32_0 : i32, i32
  }
  func.func @transform_4(%arg0: i32) -> (i32, i32) {
    %c0_i32 = arith.constant 0 : i32
    %c0_i32_0 = arith.constant 0 : i32
    %c0_i32_1 = arith.constant 0 : i32
    return %c0_i32, %c0_i32_0 : i32, i32
  }
  func.func @transform_5(%arg0: i32) -> (i32, i32) {
    %c0_i32 = arith.constant 0 : i32
    %c0_i32_0 = arith.constant 0 : i32
    %c0_i32_1 = arith.constant 0 : i32
    return %c0_i32, %c0_i32_0 : i32, i32
  }
  func.func @transform_6(%arg0: i32) -> (i32, i32) {
    %c0_i32 = arith.constant 0 : i32
    %c0_i32_0 = arith.constant 0 : i32
    %c0_i32_1 = arith.constant 0 : i32
    return %c0_i32, %c0_i32_0 : i32, i32
  }
  func.func @transform_7(%arg0: i32) -> (i32, i32) {
    %c0_i32 = arith.constant 0 : i32
    %c0_i32_0 = arith.constant 0 : i32
    %c0_i32_1 = arith.constant 0 : i32
    return %c0_i32, %c0_i32_0 : i32, i32
  }
  func.func @transform_8(%arg0: i32) -> (i32, i32) {
    %c0_i32 = arith.constant 0 : i32
    %c0_i32_0 = arith.constant 0 : i32
    %c0_i32_1 = arith.constant 0 : i32
    return %c0_i32, %c0_i32_0 : i32, i32
  }
  func.func @transform_9(%arg0: i32) -> (i32, i32) {
    %c0_i32 = arith.constant 0 : i32
    %c0_i32_0 = arith.constant 0 : i32
    %c0_i32_1 = arith.constant 0 : i32
    return %c0_i32, %c0_i32_0 : i32, i32
  }
  func.func @transform_10(%arg0: i32) -> (i32, i32) {
    %c0_i32 = arith.constant 0 : i32
    %c0_i32_0 = arith.constant 0 : i32
    %c0_i32_1 = arith.constant 0 : i32
    return %c0_i32, %c0_i32_0 : i32, i32
  }
  func.func @transform_11(%arg0: i32) -> (i32, i32) {
    %c0_i32 = arith.constant 0 : i32
    %c0_i32_0 = arith.constant 0 : i32
    return %arg0, %c0_i32 : i32, i32
  }
}

module attributes {stable_mosaic.version = 11 : i64} {
  func.func @kernel(%arg0: i32, %arg1: memref<16x128xf32, #tpu.memory_space<vmem>>, %arg2: memref<128x128xbf16, #tpu.memory_space<vmem>>, %arg3: memref<1x128xf32, #tpu.memory_space<vmem>>, %arg4: memref<128x128xbf16, #tpu.memory_space<vmem>>, %arg5: memref<1x128xf32, #tpu.memory_space<vmem>>, %arg6: memref<128x128xbf16, #tpu.memory_space<vmem>>, %arg7: memref<1x128xf32, #tpu.memory_space<vmem>>, %arg8: memref<128x128xbf16, #tpu.memory_space<vmem>>, %arg9: memref<1x128xf32, #tpu.memory_space<vmem>>, %arg10: memref<128x128xbf16, #tpu.memory_space<vmem>>, %arg11: memref<1x128xf32, #tpu.memory_space<vmem>>, %arg12: memref<16x128xf32, #tpu.memory_space<vmem>>) attributes {dimension_semantics = [#tpu.dimension_semantics<parallel>], iteration_bounds = array<i64: 1>, scalar_prefetch = 0 : i64, scratch_operands = 0 : i64, tpu.core_type = #tpu.core_type<tc>, window_params = [{transform_indices = @transform_0, window_bounds = array<i64: 16, 128>}, {pipeline_mode = #tpu.pipeline_mode<synchronous>, transform_indices = @transform_1, window_bounds = array<i64: 128, 128>}, {pipeline_mode = #tpu.pipeline_mode<synchronous>, transform_indices = @transform_2, window_bounds = array<i64: 1, 128>}, {pipeline_mode = #tpu.pipeline_mode<synchronous>, transform_indices = @transform_3, window_bounds = array<i64: 128, 128>}, {pipeline_mode = #tpu.pipeline_mode<synchronous>, transform_indices = @transform_4, window_bounds = array<i64: 1, 128>}, {pipeline_mode = #tpu.pipeline_mode<synchronous>, transform_indices = @transform_5, window_bounds = array<i64: 128, 128>}, {pipeline_mode = #tpu.pipeline_mode<synchronous>, transform_indices = @transform_6, window_bounds = array<i64: 1, 128>}, {pipeline_mode = #tpu.pipeline_mode<synchronous>, transform_indices = @transform_7, window_bounds = array<i64: 128, 128>}, {pipeline_mode = #tpu.pipeline_mode<synchronous>, transform_indices = @transform_8, window_bounds = array<i64: 1, 128>}, {pipeline_mode = #tpu.pipeline_mode<synchronous>, transform_indices = @transform_9, window_bounds = array<i64: 128, 128>}, {pipeline_mode = #tpu.pipeline_mode<synchronous>, transform_indices = @transform_10, window_bounds = array<i64: 1, 128>}, {transform_indices = @transform_11, window_bounds = array<i64: 16, 128>}]} {
    %c0 = arith.constant 0 : index
    %c0_0 = arith.constant 0 : index
    %0 = vector.load %arg1[%c0, %c0_0] : memref<16x128xf32, #tpu.memory_space<vmem>>, vector<16x128xf32>
    %1 = arith.truncf %0 : vector<16x128xf32> to vector<16x128xbf16>
    %c0_1 = arith.constant 0 : index
    %c0_2 = arith.constant 0 : index
    %2 = vector.load %arg2[%c0_1, %c0_2] : memref<128x128xbf16, #tpu.memory_space<vmem>>, vector<128x128xbf16>
    %cst = arith.constant dense<0.000000e+00> : vector<16x128xf32>
    %3 = tpu.matmul %1, %2, %cst {dimension_numbers = #tpu.dot_dimension_numbers<[1], [0], [0], [1], [0, 0, 1, 1], [], []>} : vector<16x128xbf16>, vector<128x128xbf16>, vector<16x128xf32> -> vector<16x128xf32>
    %c0_3 = arith.constant 0 : index
    %c0_4 = arith.constant 0 : index
    %4 = vector.load %arg3[%c0_3, %c0_4] : memref<1x128xf32, #tpu.memory_space<vmem>>, vector<1x128xf32>
    %5 = vector.broadcast %4 : vector<1x128xf32> to vector<16x128xf32>
    %6 = arith.addf %3, %5 : vector<16x128xf32>
    %cst_5 = arith.constant 0.000000e+00 : f32
    %7 = vector.broadcast %cst_5 : f32 to vector<16x128xf32>
    %8 = arith.maximumf %6, %7 : vector<16x128xf32>
    %9 = arith.truncf %8 : vector<16x128xf32> to vector<16x128xbf16>
    %c0_6 = arith.constant 0 : index
    %c0_7 = arith.constant 0 : index
    %10 = vector.load %arg4[%c0_6, %c0_7] : memref<128x128xbf16, #tpu.memory_space<vmem>>, vector<128x128xbf16>
    %cst_8 = arith.constant dense<0.000000e+00> : vector<16x128xf32>
    %11 = tpu.matmul %9, %10, %cst_8 {dimension_numbers = #tpu.dot_dimension_numbers<[1], [0], [0], [1], [0, 0, 1, 1], [], []>} : vector<16x128xbf16>, vector<128x128xbf16>, vector<16x128xf32> -> vector<16x128xf32>
    %c0_9 = arith.constant 0 : index
    %c0_10 = arith.constant 0 : index
    %12 = vector.load %arg5[%c0_9, %c0_10] : memref<1x128xf32, #tpu.memory_space<vmem>>, vector<1x128xf32>
    %13 = vector.broadcast %12 : vector<1x128xf32> to vector<16x128xf32>
    %14 = arith.addf %11, %13 : vector<16x128xf32>
    %15 = arith.addf %14, %6 : vector<16x128xf32>
    %16 = arith.addf %15, %0 : vector<16x128xf32>
    %17 = arith.truncf %16 : vector<16x128xf32> to vector<16x128xbf16>
    %c0_11 = arith.constant 0 : index
    %c0_12 = arith.constant 0 : index
    %18 = vector.load %arg6[%c0_11, %c0_12] : memref<128x128xbf16, #tpu.memory_space<vmem>>, vector<128x128xbf16>
    %cst_13 = arith.constant dense<0.000000e+00> : vector<16x128xf32>
    %19 = tpu.matmul %17, %18, %cst_13 {dimension_numbers = #tpu.dot_dimension_numbers<[1], [0], [0], [1], [0, 0, 1, 1], [], []>} : vector<16x128xbf16>, vector<128x128xbf16>, vector<16x128xf32> -> vector<16x128xf32>
    %c0_14 = arith.constant 0 : index
    %c0_15 = arith.constant 0 : index
    %20 = vector.load %arg7[%c0_14, %c0_15] : memref<1x128xf32, #tpu.memory_space<vmem>>, vector<1x128xf32>
    %21 = vector.broadcast %20 : vector<1x128xf32> to vector<16x128xf32>
    %22 = arith.addf %19, %21 : vector<16x128xf32>
    %cst_16 = arith.constant 0.000000e+00 : f32
    %23 = vector.broadcast %cst_16 : f32 to vector<16x128xf32>
    %24 = arith.maximumf %22, %23 : vector<16x128xf32>
    %25 = arith.truncf %24 : vector<16x128xf32> to vector<16x128xbf16>
    %c0_17 = arith.constant 0 : index
    %c0_18 = arith.constant 0 : index
    %26 = vector.load %arg8[%c0_17, %c0_18] : memref<128x128xbf16, #tpu.memory_space<vmem>>, vector<128x128xbf16>
    %cst_19 = arith.constant dense<0.000000e+00> : vector<16x128xf32>
    %27 = tpu.matmul %25, %26, %cst_19 {dimension_numbers = #tpu.dot_dimension_numbers<[1], [0], [0], [1], [0, 0, 1, 1], [], []>} : vector<16x128xbf16>, vector<128x128xbf16>, vector<16x128xf32> -> vector<16x128xf32>
    %c0_20 = arith.constant 0 : index
    %c0_21 = arith.constant 0 : index
    %28 = vector.load %arg9[%c0_20, %c0_21] : memref<1x128xf32, #tpu.memory_space<vmem>>, vector<1x128xf32>
    %29 = vector.broadcast %28 : vector<1x128xf32> to vector<16x128xf32>
    %30 = arith.addf %27, %29 : vector<16x128xf32>
    %31 = arith.addf %30, %22 : vector<16x128xf32>
    %32 = arith.addf %31, %16 : vector<16x128xf32>
    %33 = arith.truncf %32 : vector<16x128xf32> to vector<16x128xbf16>
    %c0_22 = arith.constant 0 : index
    %c0_23 = arith.constant 0 : index
    %34 = vector.load %arg10[%c0_22, %c0_23] : memref<128x128xbf16, #tpu.memory_space<vmem>>, vector<128x128xbf16>
    %cst_24 = arith.constant dense<0.000000e+00> : vector<16x128xf32>
    %35 = tpu.matmul %33, %34, %cst_24 {dimension_numbers = #tpu.dot_dimension_numbers<[1], [0], [0], [1], [0, 0, 1, 1], [], []>} : vector<16x128xbf16>, vector<128x128xbf16>, vector<16x128xf32> -> vector<16x128xf32>
    %c0_25 = arith.constant 0 : index
    %c0_26 = arith.constant 0 : index
    %36 = vector.load %arg11[%c0_25, %c0_26] : memref<1x128xf32, #tpu.memory_space<vmem>>, vector<1x128xf32>
    %37 = vector.broadcast %36 : vector<1x128xf32> to vector<16x128xf32>
    %38 = arith.addf %35, %37 : vector<16x128xf32>
    %c0_27 = arith.constant 0 : index
    %c0_28 = arith.constant 0 : index
    %39 = vector.load %arg12[%c0_27, %c0_28] : memref<16x128xf32, #tpu.memory_space<vmem>>, vector<16x128xf32>
    tpu.vector_store %arg12[%c0_27, %c0_28], %38 {strides = array<i32>} : memref<16x128xf32, #tpu.memory_space<vmem>>, vector<16x128xf32>,
    return
  }
  func.func @transform_0(%arg0: i32) -> (i32, i32) {
    %c0_i32 = arith.constant 0 : i32
    %c0_i32_0 = arith.constant 0 : i32
    return %arg0, %c0_i32 : i32, i32
  }
  func.func @transform_1(%arg0: i32) -> (i32, i32) {
    %c0_i32 = arith.constant 0 : i32
    %c0_i32_0 = arith.constant 0 : i32
    %c0_i32_1 = arith.constant 0 : i32
    return %c0_i32, %c0_i32_0 : i32, i32
  }
  func.func @transform_2(%arg0: i32) -> (i32, i32) {
    %c0_i32 = arith.constant 0 : i32
    %c0_i32_0 = arith.constant 0 : i32
    %c0_i32_1 = arith.constant 0 : i32
    return %c0_i32, %c0_i32_0 : i32, i32
  }
  func.func @transform_3(%arg0: i32) -> (i32, i32) {
    %c0_i32 = arith.constant 0 : i32
    %c0_i32_0 = arith.constant 0 : i32
    %c0_i32_1 = arith.constant 0 : i32
    return %c0_i32, %c0_i32_0 : i32, i32
  }
  func.func @transform_4(%arg0: i32) -> (i32, i32) {
    %c0_i32 = arith.constant 0 : i32
    %c0_i32_0 = arith.constant 0 : i32
    %c0_i32_1 = arith.constant 0 : i32
    return %c0_i32, %c0_i32_0 : i32, i32
  }
  func.func @transform_5(%arg0: i32) -> (i32, i32) {
    %c0_i32 = arith.constant 0 : i32
    %c0_i32_0 = arith.constant 0 : i32
    %c0_i32_1 = arith.constant 0 : i32
    return %c0_i32, %c0_i32_0 : i32, i32
  }
  func.func @transform_6(%arg0: i32) -> (i32, i32) {
    %c0_i32 = arith.constant 0 : i32
    %c0_i32_0 = arith.constant 0 : i32
    %c0_i32_1 = arith.constant 0 : i32
    return %c0_i32, %c0_i32_0 : i32, i32
  }
  func.func @transform_7(%arg0: i32) -> (i32, i32) {
    %c0_i32 = arith.constant 0 : i32
    %c0_i32_0 = arith.constant 0 : i32
    %c0_i32_1 = arith.constant 0 : i32
    return %c0_i32, %c0_i32_0 : i32, i32
  }
  func.func @transform_8(%arg0: i32) -> (i32, i32) {
    %c0_i32 = arith.constant 0 : i32
    %c0_i32_0 = arith.constant 0 : i32
    %c0_i32_1 = arith.constant 0 : i32
    return %c0_i32, %c0_i32_0 : i32, i32
  }
  func.func @transform_9(%arg0: i32) -> (i32, i32) {
    %c0_i32 = arith.constant 0 : i32
    %c0_i32_0 = arith.constant 0 : i32
    %c0_i32_1 = arith.constant 0 : i32
    return %c0_i32, %c0_i32_0 : i32, i32
  }
  func.func @transform_10(%arg0: i32) -> (i32, i32) {
    %c0_i32 = arith.constant 0 : i32
    %c0_i32_0 = arith.constant 0 : i32
    %c0_i32_1 = arith.constant 0 : i32
    return %c0_i32, %c0_i32_0 : i32, i32
  }
  func.func @transform_11(%arg0: i32) -> (i32, i32) {
    %c0_i32 = arith.constant 0 : i32
    %c0_i32_0 = arith.constant 0 : i32
    return %arg0, %c0_i32 : i32, i32
  }
}

</mosaic_0001>

<bundles_post_ra>
// kernel: tpu_custom_call.1
= control target key start
LH: loop header
LB: loop body
LE: loop exit
PB: predicated region body
PF: predicated region fallthrough
CT: control target
= control target key end

     0   :  { %16 = vsyncpa [#allocation3], 0  ;;  %s1381_s0 = inlined_call_operand.hbm [shape: f32[16,128], index: 0, kind: input, shape index: {}]   ;;  %s1382_s1 = inlined_call_operand.hbm [shape: bf16[128,128], index: 1, kind: input, shape index: {}]   ;;  %s1383_s2 = inlined_call_operand.vmem [shape: f32[1,128], index: 2, kind: input, shape index: {}]   ;;  %s1384_s3 = inlined_call_operand.hbm [shape: bf16[128,128], index: 3, kind: input, shape index: {}]   ;;  %s1385_s4 = inlined_call_operand.vmem [shape: f32[1,128], index: 4, kind: input, shape index: {}]   ;;  %s1386_s5 = inlined_call_operand.hbm [shape: bf16[128,128], index: 5, kind: input, shape index: {}]   ;;  %s1387_s6 = inlined_call_operand.vmem [shape: f32[1,128], index: 6, kind: input, shape index: {}]   ;;  %s1388_s7 = inlined_call_operand.hbm [shape: bf16[128,128], index: 7, kind: input, shape index: {}]   ;;  %s1389_s8 = inlined_call_operand.vmem [shape: f32[1,128], index: 8, kind: input, shape index: {}]   ;;  %s1390_s9 = inlined_call_operand.hbm [shape: bf16[128,128], index: 9, kind: input, shape index: {}]   ;;  %s1391_s10 = inlined_call_operand.vmem [shape: f32[1,128], index: 10, kind: input, shape index: {}]   ;;  %s1392_s11 = inlined_call_operand.hbm [shape: f32[16,128], index: 11, kind: output, shape index: {}]  }
   0x1   :  { %17 = vsyncpa [#allocation6], 0 }
   0x2   :  { %18 = vsyncpa [#allocation9], 0 }
   0x3   :  { %19 = vsyncpa [#allocation12], 0 }
   0x4   :  { %20 = vsyncpa [#allocation4], 0  ;;  %s1130_s17 = smov [#allocation5]   ;;  %s966_s21 = scalar_lea.hbm %s1382_s1, 1024 }
   0x5   :  { %s38_s18 = sshll.u32 %s1130_s17, 4  ;;  %p967_p0 = scmp.ne.s32.totalorder %s1382_s1, %s966_s21  ;;  %s39_s18 = int_to_ptr.vmem [resolvable:$true] %s38_s18 }
   0x6   :  { %p970_p1 = scmp.lt.u32.totalorder %s966_s21, %s1382_s1 }
   0x8   :  { %p972_p2 = pnand %p970_p1, %p967_p0 }
   0xa   :  { %975 = shalt.err (!%p972_p2)
}
   0xb   :  { %s976_s26 = scalar_lea.vmem %s39_s18, 1024  ;;  %p981_p4 = scmp.lt.s32.totalorder %s39_s18, %s39_s18 }
   0xc   :  { %p977_p3 = scmp.ne.s32.totalorder %s39_s18, %s976_s26  ;;  %p982_p5 = scmp.lt.s32.totalorder %s976_s26, %s976_s26 }
   0xe   :  { %p983_p6 = por %p982_p5, %p981_p4 }
  0x10   :  { %p984_p7 = pnand %p983_p6, %p977_p3 }
  0x12   :  { %987 = shalt.err (!%p984_p7)
}
  0x13   :  { %s1131_s27 = smov 64   ;;  %s1132_s28 = smov 4  }
  0x14   :  { %44 = dma.hbm_to_vmem [thread:$0]  %s1382_s1, 1024, %s39_s18, [#allocation6], %s1131_s27, %s1131_s27, %s1132_s28  }
  0x15   :  { %s1133_s12 = smov [#allocation8]   ;;  %s1134_s14 = smov [#allocation2]  }
  0x16   :  { %s66_s13 = sshll.u32 %s1133_s12, 4  ;;  %s26_s15 = sshll.u32 %s1134_s14, 4  ;;  %s67_s13 = int_to_ptr.vmem [resolvable:$true] %s66_s13  ;;  %s27_s15 = int_to_ptr.vmem [resolvable:$true] %s26_s15 }
  0x17   :  { %s988_s19 = scalar_lea.hbm %s1386_s5, 1024 }
  0x18   :  { %p989_p8 = scmp.ne.s32.totalorder %s1386_s5, %s988_s19  ;;  %p992_p9 = scmp.lt.u32.totalorder %s988_s19, %s1386_s5 }
  0x1a   :  { %p994_p10 = pnand %p992_p9, %p989_p8 }
  0x1c   :  { %997 = shalt.err (!%p994_p10)
}
  0x1d   :  { %s998_s1 = scalar_lea.vmem %s67_s13, 1024  ;;  %p1003_p12 = scmp.lt.s32.totalorder %s67_s13, %s67_s13 }
  0x1e   :  { %p999_p11 = scmp.ne.s32.totalorder %s67_s13, %s998_s1  ;;  %p1004_p13 = scmp.lt.s32.totalorder %s998_s1, %s998_s1 }
  0x20   :  { %p1005_p0 = por %p1004_p13, %p1003_p12 }
  0x22   :  { %p1006_p1 = pnand %p1005_p0, %p999_p11 }
  0x24   :  { %1009 = shalt.err (!%p1006_p1)
}
  0x25   :  { %72 = dma.hbm_to_vmem [thread:$0]  %s1386_s5, 1024, %s67_s13, [#allocation9], %s1131_s27, %s1131_s27, %s1132_s28  }
  0x26   :  { %s1010_s29 = scalar_lea.hbm %s1381_s0, 256 }
  0x27   :  { %p1011_p2 = scmp.ne.s32.totalorder %s1381_s0, %s1010_s29  ;;  %p1014_p3 = scmp.lt.u32.totalorder %s1010_s29, %s1381_s0 }
  0x29   :  { %p1016_p4 = pnand %p1014_p3, %p1011_p2 }
  0x2b   :  { %1019 = shalt.err (!%p1016_p4)
}
  0x2c   :  { %s1020_s17 = scalar_lea.vmem %s27_s15, 256  ;;  %p1025_p6 = scmp.lt.s32.totalorder %s27_s15, %s27_s15 }
  0x2d   :  { %p1021_p5 = scmp.ne.s32.totalorder %s27_s15, %s1020_s17  ;;  %p1026_p7 = scmp.lt.s32.totalorder %s1020_s17, %s1020_s17 }
  0x2f   :  { %p1027_p8 = por %p1026_p7, %p1025_p6 }
  0x31   :  { %p1028_p9 = pnand %p1027_p8, %p1021_p5 }
  0x33   :  { %1031 = shalt.err (!%p1028_p9)
}
  0x34   :  { %s1135_s5 = smov 128   ;;  %s1136_s13 = smov 8  }
  0x35   :  { %32 = dma.hbm_to_vmem [thread:$0]  %s1381_s0, 256, %s27_s15, [#allocation3], %s1135_s5, %s1135_s5, %s1136_s13  }
  0x36   :  { %s1137_s21 = smov [#allocation7]   ;;  %s1138_s23 = smov [#allocation10]  }
  0x37   :  { %s52_s22 = sshll.u32 %s1137_s21, 4  ;;  %s80_s1 = sshll.u32 %s1138_s23, 4  ;;  %s53_s22 = int_to_ptr.vmem [resolvable:$true] %s52_s22  ;;  %s81_s1 = int_to_ptr.vmem [resolvable:$true] %s80_s1 }
  0x38   :  { %s1032_s25 = scalar_lea.hbm %s1384_s3, 1024 }
  0x39   :  { %p1033_p10 = scmp.ne.s32.totalorder %s1384_s3, %s1032_s25  ;;  %p1036_p11 = scmp.lt.u32.totalorder %s1032_s25, %s1384_s3 }
  0x3b   :  { %p1038_p12 = pnand %p1036_p11, %p1033_p10 }
  0x3d   :  { %1041 = shalt.err (!%p1038_p12)
}
  0x3e   :  { %s1042_s0 = scalar_lea.vmem %s53_s22, 1024  ;;  %p1047_p0 = scmp.lt.s32.totalorder %s53_s22, %s53_s22 }
  0x3f   :  { %p1043_p13 = scmp.ne.s32.totalorder %s53_s22, %s1042_s0  ;;  %p1048_p1 = scmp.lt.s32.totalorder %s1042_s0, %s1042_s0 }
  0x41   :  { %p1049_p2 = por %p1048_p1, %p1047_p0 }
  0x43   :  { %p1050_p3 = pnand %p1049_p2, %p1043_p13 }
  0x45   :  { %1053 = shalt.err (!%p1050_p3)
}
  0x46   :  { %58 = dma.hbm_to_vmem [thread:$0]  %s1384_s3, 1024, %s53_s22, [#allocation6], %s1131_s27, %s1131_s27, %s1132_s28  }
  0x47   :  { %s1054_s19 = scalar_lea.hbm %s1388_s7, 1024 }
  0x48   :  { %p1055_p4 = scmp.ne.s32.totalorder %s1388_s7, %s1054_s19  ;;  %p1058_p5 = scmp.lt.u32.totalorder %s1054_s19, %s1388_s7 }
  0x4a   :  { %p1060_p6 = pnand %p1058_p5, %p1055_p4 }
  0x4c   :  { %1063 = shalt.err (!%p1060_p6)
}
  0x4d   :  { %s1064_s24 = scalar_lea.vmem %s81_s1, 1024  ;;  %p1069_p8 = scmp.lt.s32.totalorder %s81_s1, %s81_s1 }
  0x4e   :  { %p1065_p7 = scmp.ne.s32.totalorder %s81_s1, %s1064_s24  ;;  %p1070_p9 = scmp.lt.s32.totalorder %s1064_s24, %s1064_s24 }
  0x50   :  { %p1071_p10 = por %p1070_p9, %p1069_p8 }
  0x52   :  { %p1072_p11 = pnand %p1071_p10, %p1065_p7 }
  0x54   :  { %1075 = shalt.err (!%p1072_p11)
}
  0x55   :  { %86 = dma.hbm_to_vmem [thread:$0]  %s1388_s7, 1024, %s81_s1, [#allocation9], %s1131_s27, %s1131_s27, %s1132_s28  }
  0x56   :  { %s1139_s25 = smov [#allocation11]   ;;  %s1076_s12 = scalar_lea.hbm %s1390_s9, 1024 }
  0x57   :  { %s94_s26 = sshll.u32 %s1139_s25, 4  ;;  %p1077_p12 = scmp.ne.s32.totalorder %s1390_s9, %s1076_s12  ;;  %s95_s26 = int_to_ptr.vmem [resolvable:$true] %s94_s26 }
  0x58   :  { %p1080_p13 = scmp.lt.u32.totalorder %s1076_s12, %s1390_s9 }
  0x5a   :  { %p1082_p0 = pnand %p1080_p13, %p1077_p12 }
  0x5c   :  { %1085 = shalt.err (!%p1082_p0)
}
  0x5d   :  { %s1086_s17 = scalar_lea.vmem %s95_s26, 1024  ;;  %p1091_p2 = scmp.lt.s32.totalorder %s95_s26, %s95_s26 }
  0x5e   :  { %p1087_p1 = scmp.ne.s32.totalorder %s95_s26, %s1086_s17  ;;  %p1092_p3 = scmp.lt.s32.totalorder %s1086_s17, %s1086_s17 }
  0x60   :  { %p1093_p4 = por %p1092_p3, %p1091_p2 }
  0x62   :  { %p1094_p5 = pnand %p1093_p4, %p1087_p1 }
  0x64   :  { %1097 = shalt.err (!%p1094_p5)
}
  0x65   :  { %100 = dma.hbm_to_vmem [thread:$0]  %s1390_s9, 1024, %s95_s26, [#allocation12], %s1131_s27, %s1131_s27, %s1132_s28  }
  0x66   :  { %1120 = dma.done.wait [#allocation3], 256  }
  0x67   :  { %1121 = vsyncadd [#allocation3], 4294967040 }
  0x68   :  { %1122 = dma.done.wait [#allocation6], 2048  }
  0x69   :  { %1123 = vsyncadd [#allocation6], 4294965248 }
  0x6a   :  { %1124 = dma.done.wait [#allocation9], 2048  }
  0x6b   :  { %1125 = vsyncadd [#allocation9], 4294965248 }
  0x6c   :  { %1126 = dma.done.wait [#allocation12], 1024  }
  0x6d   :  { %1127 = vsyncadd [#allocation12], 4294966272  ;;  %v1140_v0 = vmov 0.0   ;;  %vm1141_vm0 = vmmov 0   ;;  %v926_v1 = vld [vmem:[#allocation5] sm:$0xff]   ;;  %v927_v2 = vld [vmem:[#allocation5 + $0x8] sm:$0xff]  }
  0x6e   :  { %813 = vmatprep.subr.bf16.mxu0 %v1140_v0  ;;  %829 = vmatprep.mubr.msk.bf16.mxu0 %vm1141_vm0, %v1140_v0  ;;  %v928_v3 = vld [vmem:[#allocation5 + $0x10] sm:$0xff]   ;;  %v934_v4 = vld [vmem:[#allocation7] sm:$0xff]   ;;  %v929_v5 = vld [vmem:[#allocation5 + $0x18] sm:$0xff]   ;;  %s1142_s18 = smov [#allocation13]  }
  0x6f   :  { %833 = vmatprep.subr.bf16.mxu1 %v1140_v0  ;;  %849 = vmatprep.mubr.msk.bf16.mxu1 %vm1141_vm0, %v1140_v0  ;;  %v935_v6 = vld [vmem:[#allocation7 + $0x8] sm:$0xff]   ;;  %v930_v7 = vld [vmem:[#allocation5 + $0x20] sm:$0xff]   ;;  %v936_v8 = vld [vmem:[#allocation7 + $0x10] sm:$0xff]   ;;  %s708_s24 = sshll.u32 %s1142_s18, 4  ;;  %s709_s24 = int_to_ptr.vmem [resolvable:$true] %s708_s24 }
  0x70   :  { %814 = vmatpush3.bf16.msra.mxu0 %v926_v1  ;;  %834 = vmatpush3.bf16.msra.mxu1 %v934_v4  ;;  %v931_v9 = vld [vmem:[#allocation5 + $0x28] sm:$0xff]   ;;  %v937_v10 = vld [vmem:[#allocation7 + $0x18] sm:$0xff]   ;;  %v932_v11 = vld [vmem:[#allocation5 + $0x30] sm:$0xff]   ;;  %p1103_p7 = scmp.lt.s32.totalorder %s709_s24, %s709_s24 }
  0x71   :  { %815 = vmatprep.subr.bf16.mxu0 %v1140_v0  ;;  %835 = vmatprep.subr.bf16.mxu1 %v1140_v0  ;;  %v938_v12 = vld [vmem:[#allocation7 + $0x20] sm:$0xff]   ;;  %v933_v13 = vld [vmem:[#allocation5 + $0x38] sm:$0xff]   ;;  %v1308_v14 = vld [vmem:[#allocation2] sm:$0xff] }
  0x72   :  { %v1310_v15 = vld [vmem:[#allocation2 + $0x8] sm:$0xff]  ;;  %v939_v16 = vld [vmem:[#allocation7 + $0x28] sm:$0xff]   ;;  %v940_v18 = vld [vmem:[#allocation7 + $0x30] sm:$0xff]  }
  0x73   :  { %v124_v17 = vpack.c.bf16 %v1310_v15, %v1308_v14  ;;  %v941_v19 = vld [vmem:[#allocation7 + $0x38] sm:$0xff]   ;;  %v942_v20 = vld [vmem:[#allocation8] sm:$0xff]   ;;  %v943_v21 = vld [vmem:[#allocation8 + $0x8] sm:$0xff]  }
  0x74   :  { %816 = vmatpush3.bf16.msra.mxu0 %v927_v2  ;;  %836 = vmatpush3.bf16.msra.mxu1 %v935_v6  ;;  %v944_v22 = vld [vmem:[#allocation8 + $0x10] sm:$0xff]   ;;  %v945_v23 = vld [vmem:[#allocation8 + $0x18] sm:$0xff]   ;;  %v946_v24 = vld [vmem:[#allocation8 + $0x20] sm:$0xff]  }
  0x75   :  { %817 = vmatprep.subr.bf16.mxu0 %v1140_v0  ;;  %837 = vmatprep.subr.bf16.mxu1 %v1140_v0  ;;  %v723_v25 = vld [vmem:[%s1383_s2] ss:$0 sm:$0xff]  ;;  %v947_v35 = vld [vmem:[#allocation8 + $0x28] sm:$0xff]   ;;  %v949_v37 = vld [vmem:[#allocation8 + $0x38] sm:$0xff]  }
  0x76   :  { %v948_v36 = vld [vmem:[#allocation8 + $0x30] sm:$0xff]   ;;  %v950_v38 = vld [vmem:[#allocation10] sm:$0xff]   ;;  %v951_v39 = vld [vmem:[#allocation10 + $0x8] sm:$0xff]  }
  0x77   :  { %v952_v40 = vld [vmem:[#allocation10 + $0x10] sm:$0xff]   ;;  %v953_v41 = vld [vmem:[#allocation10 + $0x18] sm:$0xff]   ;;  %v954_v42 = vld [vmem:[#allocation10 + $0x20] sm:$0xff]  }
  0x78   :  { %818 = vmatpush3.bf16.msra.mxu0 %v928_v3  ;;  %838 = vmatpush3.bf16.msra.mxu1 %v936_v8  ;;  %v955_v43 = vld [vmem:[#allocation10 + $0x28] sm:$0xff]   ;;  %v732_v44 = vld [vmem:[%s1385_s4] ss:$0 sm:$0xff]  ;;  %v957_v57 = vld [vmem:[#allocation10 + $0x38] sm:$0xff]  }
  0x79   :  { %819 = vmatprep.subr.bf16.mxu0 %v1140_v0  ;;  %839 = vmatprep.subr.bf16.mxu1 %v1140_v0  ;;  %v956_v56 = vld [vmem:[#allocation10 + $0x30] sm:$0xff]   ;;  %v958_v58 = vld [vmem:[#allocation11] sm:$0xff]   ;;  %v959_v59 = vld [vmem:[#allocation11 + $0x8] sm:$0xff]  }
  0x7a   :  { %v960_v60 = vld [vmem:[#allocation11 + $0x10] sm:$0xff]   ;;  %v961_v61 = vld [vmem:[#allocation11 + $0x18] sm:$0xff]   ;;  %v962_v62 = vld [vmem:[#allocation11 + $0x20] sm:$0xff]  }
  0x7b   :  { %v741_v63 = vld [vmem:[%s1387_s6] ss:$0 sm:$0xff] }
  0x7c   :  { %820 = vmatpush3.bf16.msra.mxu0 %v929_v5  ;;  %840 = vmatpush3.bf16.msra.mxu1 %v937_v10  ;;  %v963_v10 = vld [vmem:[#allocation11 + $0x28] sm:$0xff]  }
  0x7d   :  { %821 = vmatprep.subr.bf16.mxu0 %v1140_v0  ;;  %841 = vmatprep.subr.bf16.mxu1 %v1140_v0 }
  0x80   :  { %822 = vmatpush3.bf16.msra.mxu0 %v930_v7  ;;  %842 = vmatpush3.bf16.msra.mxu1 %v938_v12  ;;  %v965_v12 = vld [vmem:[#allocation11 + $0x38] sm:$0xff]  }
  0x81   :  { %823 = vmatprep.subr.bf16.mxu0 %v1140_v0  ;;  %843 = vmatprep.subr.bf16.mxu1 %v1140_v0 }
  0x84   :  { %824 = vmatpush3.bf16.msra.mxu0 %v931_v9  ;;  %844 = vmatpush3.bf16.msra.mxu1 %v939_v16 }
  0x85   :  { %825 = vmatprep.subr.bf16.mxu0 %v1140_v0  ;;  %845 = vmatprep.subr.bf16.mxu1 %v1140_v0 }
  0x88   :  { %826 = vmatpush3.bf16.msra.mxu0 %v932_v11  ;;  %846 = vmatpush3.bf16.msra.mxu1 %v940_v18  ;;  %v964_v11 = vld [vmem:[#allocation11 + $0x30] sm:$0xff]  }
  0x89   :  { %827 = vmatprep.subr.bf16.mxu0 %v1140_v0  ;;  %847 = vmatprep.subr.bf16.mxu1 %v1140_v0 }
  0x8c   :  { %828 = vmatpush3.bf16.msra.mxu0 %v933_v13  ;;  %848 = vmatpush3.bf16.msra.mxu1 %v941_v19  ;;  %v750_v13 = vld [vmem:[%s1389_s8] ss:$0 sm:$0xff]  ;;  %s1098_s8 = scalar_lea.vmem %s709_s24, 256 }
  0x8d   :  { %853 = vmatprep.subr.bf16.mxu0 %v1140_v0  ;;  %873 = vmatprep.subr.bf16.mxu1 %v1140_v0  ;;  %p1099_p6 = scmp.ne.s32.totalorder %s709_s24, %s1098_s8  ;;  %p1104_p8 = scmp.lt.s32.totalorder %s1098_s8, %s1098_s8 }
  0x8f   :  { %830 = vmatmul.mubr.bf16.vlgmr.msra.gmra.mrb[0].mxu0 %v124_v17  ;;  %p1105_p9 = por %p1104_p8, %p1103_p7 }
  0x90   :  { %869 = vmatprep.mubr.msk.bf16.mxu0 %vm1141_vm0, %v1140_v0  ;;  %854 = vmatpush3.bf16.msra.mxu0 %v942_v20 }
  0x91   :  { %855 = vmatprep.subr.bf16.mxu0 %v1140_v0  ;;  %p1106_p10 = pnand %p1105_p9, %p1099_p6 }
  0x94   :  { %856 = vmatpush3.bf16.msra.mxu0 %v943_v21 }
  0x95   :  { %857 = vmatprep.subr.bf16.mxu0 %v1140_v0 }
  0x98   :  { %858 = vmatpush3.bf16.msra.mxu0 %v944_v22 }
  0x99   :  { %859 = vmatprep.subr.bf16.mxu0 %v1140_v0 }
  0x9c   :  { %860 = vmatpush3.bf16.msra.mxu0 %v945_v23 }
  0x9d   :  { %861 = vmatprep.subr.bf16.mxu0 %v1140_v0 }
  0xa0   :  { %862 = vmatpush3.bf16.msra.mxu0 %v946_v24 }
  0xa1   :  { %863 = vmatprep.subr.bf16.mxu0 %v1140_v0 }
  0xa4   :  { %864 = vmatpush3.bf16.msra.mxu0 %v947_v35 }
  0xa5   :  { %865 = vmatprep.subr.bf16.mxu0 %v1140_v0 }
  0xa8   :  { %866 = vmatpush3.bf16.msra.mxu0 %v948_v36 }
  0xa9   :  { %867 = vmatprep.subr.bf16.mxu0 %v1140_v0 }
  0xac   :  { %868 = vmatpush3.bf16.msra.mxu0 %v949_v37 }
  0xad   :  { %893 = vmatprep.subr.bf16.mxu0 %v1140_v0 }
 0x162   :  { %v230_v26 = vpop.f32.mrb[0].mxu0 }
 0x163   :  { %v231_v27 = vadd.f32 %v723_v25, %v230_v26  ;;  %v831_v28 = vpop.f32.mrb[1].mxu0 }
 0x164   :  { %v233_v29 = vpop.f32.mrb[2].mxu0 }
 0x165   :  { %v234_v30 = vadd.f32 %v723_v25, %v233_v29  ;;  %v832_v31 = vpop.f32.mrb[3].mxu0  ;;  %v237_v32 = vmax.f32 %v231_v27, 0.0 }
 0x167   :  { %v238_v33 = vmax.f32 %v234_v30, 0.0 }
 0x169   :  { %v239_v34 = vpack.c.bf16 %v238_v33, %v237_v32 }
 0x16b   :  { %850 = vmatmul.mubr.bf16.vlgmr.msra.gmra.mrb[0].mxu1 %v239_v34 }
 0x16c   :  { %889 = vmatprep.mubr.msk.bf16.mxu1 %vm1141_vm0, %v1140_v0  ;;  %874 = vmatpush3.bf16.msra.mxu1 %v950_v38 }
 0x16d   :  { %875 = vmatprep.subr.bf16.mxu1 %v1140_v0 }
 0x170   :  { %876 = vmatpush3.bf16.msra.mxu1 %v951_v39 }
 0x171   :  { %877 = vmatprep.subr.bf16.mxu1 %v1140_v0 }
 0x174   :  { %878 = vmatpush3.bf16.msra.mxu1 %v952_v40 }
 0x175   :  { %879 = vmatprep.subr.bf16.mxu1 %v1140_v0 }
 0x178   :  { %880 = vmatpush3.bf16.msra.mxu1 %v953_v41 }
 0x179   :  { %881 = vmatprep.subr.bf16.mxu1 %v1140_v0 }
 0x17c   :  { %882 = vmatpush3.bf16.msra.mxu1 %v954_v42 }
 0x17d   :  { %883 = vmatprep.subr.bf16.mxu1 %v1140_v0 }
 0x180   :  { %884 = vmatpush3.bf16.msra.mxu1 %v955_v43 }
 0x181   :  { %885 = vmatprep.subr.bf16.mxu1 %v1140_v0 }
 0x184   :  { %886 = vmatpush3.bf16.msra.mxu1 %v956_v56 }
 0x185   :  { %887 = vmatprep.subr.bf16.mxu1 %v1140_v0 }
 0x188   :  { %888 = vmatpush3.bf16.msra.mxu1 %v957_v57 }
 0x23e   :  { %v345_v45 = vpop.f32.mrb[0].mxu1 }
 0x23f   :  { %v346_v46 = vadd.f32 %v732_v44, %v345_v45  ;;  %v851_v47 = vpop.f32.mrb[1].mxu1 }
 0x240   :  { %v348_v48 = vpop.f32.mrb[2].mxu1 }
 0x241   :  { %v352_v49 = vadd.f32 %v346_v46, %v231_v27  ;;  %v349_v50 = vadd.f32 %v732_v44, %v348_v48  ;;  %v852_v51 = vpop.f32.mrb[3].mxu1 }
 0x243   :  { %v353_v52 = vadd.f32 %v349_v50, %v234_v30  ;;  %v354_v53 = vadd.f32 %v352_v49, %v1308_v14 }
 0x245   :  { %v355_v54 = vadd.f32 %v353_v52, %v1310_v15 }
 0x247   :  { %v356_v55 = vpack.c.bf16 %v355_v54, %v354_v53 }
 0x249   :  { %870 = vmatmul.mubr.bf16.vlgmr.msra.gmra.mrb[4].mxu0 %v356_v55 }
 0x24a   :  { %909 = vmatprep.mubr.msk.bf16.mxu0 %vm1141_vm0, %v1140_v0  ;;  %894 = vmatpush3.bf16.msra.mxu0 %v958_v58 }
 0x24b   :  { %895 = vmatprep.subr.bf16.mxu0 %v1140_v0 }
 0x24e   :  { %896 = vmatpush3.bf16.msra.mxu0 %v959_v59 }
 0x24f   :  { %897 = vmatprep.subr.bf16.mxu0 %v1140_v0 }
 0x252   :  { %898 = vmatpush3.bf16.msra.mxu0 %v960_v60 }
 0x253   :  { %899 = vmatprep.subr.bf16.mxu0 %v1140_v0 }
 0x256   :  { %900 = vmatpush3.bf16.msra.mxu0 %v961_v61 }
 0x257   :  { %901 = vmatprep.subr.bf16.mxu0 %v1140_v0 }
 0x25a   :  { %902 = vmatpush3.bf16.msra.mxu0 %v962_v62 }
 0x25b   :  { %903 = vmatprep.subr.bf16.mxu0 %v1140_v0 }
 0x25e   :  { %904 = vmatpush3.bf16.msra.mxu0 %v963_v10 }
 0x25f   :  { %905 = vmatprep.subr.bf16.mxu0 %v1140_v0 }
 0x262   :  { %906 = vmatpush3.bf16.msra.mxu0 %v964_v11 }
 0x263   :  { %907 = vmatprep.subr.bf16.mxu0 %v1140_v0  ;;  %v759_v0 = vld [vmem:[%s1391_s10] ss:$0 sm:$0xff] }
 0x266   :  { %908 = vmatpush3.bf16.msra.mxu0 %v965_v12 }
 0x31c   :  { %v462_v1 = vpop.f32.mrb[4].mxu0 }
 0x31d   :  { %v463_v2 = vadd.f32 %v741_v63, %v462_v1  ;;  %v871_v3 = vpop.f32.mrb[5].mxu0 }
 0x31e   :  { %v465_v4 = vpop.f32.mrb[6].mxu0 }
 0x31f   :  { %v466_v5 = vadd.f32 %v741_v63, %v465_v4  ;;  %v872_v6 = vpop.f32.mrb[7].mxu0  ;;  %v469_v7 = vmax.f32 %v463_v2, 0.0 }
 0x321   :  { %v470_v8 = vmax.f32 %v466_v5, 0.0 }
 0x323   :  { %v471_v9 = vpack.c.bf16 %v470_v8, %v469_v7 }
 0x325   :  { %890 = vmatmul.mubr.bf16.vlgmr.msra.gmra.mrb[4].mxu1 %v471_v9 }
 0x3f8   :  { %v577_v14 = vpop.f32.mrb[4].mxu1 }
 0x3f9   :  { %v578_v15 = vadd.f32 %v750_v13, %v577_v14  ;;  %v891_v16 = vpop.f32.mrb[5].mxu1 }
 0x3fa   :  { %v580_v17 = vpop.f32.mrb[6].mxu1 }
 0x3fb   :  { %v584_v18 = vadd.f32 %v578_v15, %v463_v2  ;;  %v581_v19 = vadd.f32 %v750_v13, %v580_v17  ;;  %v892_v20 = vpop.f32.mrb[7].mxu1 }
 0x3fd   :  { %v585_v21 = vadd.f32 %v581_v19, %v466_v5  ;;  %v586_v22 = vadd.f32 %v584_v18, %v354_v53 }
 0x3ff   :  { %v587_v23 = vadd.f32 %v585_v21, %v355_v54 }
 0x401   :  { %v588_v24 = vpack.c.bf16 %v587_v23, %v586_v22 }
 0x403   :  { %910 = vmatmul.mubr.bf16.vlgmr.msra.gmra.mrb[8].mxu0 %v588_v24 }
 0x4d6   :  { %v694_v25 = vpop.f32.mrb[8].mxu0 }
 0x4d7   :  { %v695_v26 = vadd.f32 %v759_v0, %v694_v25  ;;  %v911_v27 = vpop.f32.mrb[9].mxu0 }
 0x4d8   :  { %v697_v28 = vpop.f32.mrb[10].mxu0 }
 0x4d9   :  { %701 = vst [vmem:[#allocation13] sm:$0xff] %v695_v26  ;;  %v698_v29 = vadd.f32 %v759_v0, %v697_v28  ;;  %v912_v30 = vpop.f32.mrb[11].mxu0 }
 0x4db   :  { %702 = vst [vmem:[#allocation13 + $0x8] sm:$0xff] %v698_v29 }
 0x4dc   :  { %1109 = shalt.err (!%p1106_p10)
}
 0x4dd   :  { %s1110_s22 = scalar_lea.hbm %s1392_s11, 256 }
 0x4de   :  { %p1111_p11 = scmp.ne.s32.totalorder %s1392_s11, %s1110_s22  ;;  %p1114_p12 = scmp.lt.u32.totalorder %s1110_s22, %s1392_s11 }
 0x4e0   :  { %p1116_p13 = pnand %p1114_p12, %p1111_p11 }
 0x4e2   :  { %1119 = shalt.err (!%p1116_p13)
}
 0x4e3   :  { %714 = dma.vmem_to_hbm [thread:$0]  %s709_s24, 256, %s1392_s11, [#allocation4], %s1135_s5, %s1135_s5, %s1136_s13  }
 0x4e4   :  { %1128 = dma.done.wait [#allocation4], 256  }
 0x4e5   :  { %1129 = vsyncadd [#allocation4], 4294967040 }
 0x4e6   :  { %718 = vsyncpa [#allocation3], 1 }
 0x4e7   :  { %719 = vsyncpa [#allocation6], 1 }
 0x4e8   :  { %720 = vsyncpa [#allocation9], 1 }
 0x4e9   :  { %721 = vsyncpa [#allocation12], 1 }
 0x4ea   :  { %722 = vsyncpa [#allocation4], 1 }

// kernel: tpu_custom_call.1
= control target key start
LH: loop header
LB: loop body
LE: loop exit
PB: predicated region body
PF: predicated region fallthrough
CT: control target
= control target key end

     0   :  { %16 = vsyncpa [#allocation3], 0  ;;  %s1381_s0 = inlined_call_operand.hbm [shape: f32[16,128], index: 0, kind: input, shape index: {}]   ;;  %s1382_s1 = inlined_call_operand.hbm [shape: bf16[128,128], index: 1, kind: input, shape index: {}]   ;;  %s1383_s2 = inlined_call_operand.vmem [shape: f32[1,128], index: 2, kind: input, shape index: {}]   ;;  %s1384_s3 = inlined_call_operand.hbm [shape: bf16[128,128], index: 3, kind: input, shape index: {}]   ;;  %s1385_s4 = inlined_call_operand.vmem [shape: f32[1,128], index: 4, kind: input, shape index: {}]   ;;  %s1386_s5 = inlined_call_operand.hbm [shape: bf16[128,128], index: 5, kind: input, shape index: {}]   ;;  %s1387_s6 = inlined_call_operand.vmem [shape: f32[1,128], index: 6, kind: input, shape index: {}]   ;;  %s1388_s7 = inlined_call_operand.hbm [shape: bf16[128,128], index: 7, kind: input, shape index: {}]   ;;  %s1389_s8 = inlined_call_operand.vmem [shape: f32[1,128], index: 8, kind: input, shape index: {}]   ;;  %s1390_s9 = inlined_call_operand.hbm [shape: bf16[128,128], index: 9, kind: input, shape index: {}]   ;;  %s1391_s10 = inlined_call_operand.vmem [shape: f32[1,128], index: 10, kind: input, shape index: {}]   ;;  %s1392_s11 = inlined_call_operand.hbm [shape: f32[16,128], index: 11, kind: output, shape index: {}]  }
   0x1   :  { %17 = vsyncpa [#allocation6], 0 }
   0x2   :  { %18 = vsyncpa [#allocation9], 0 }
   0x3   :  { %19 = vsyncpa [#allocation12], 0 }
   0x4   :  { %20 = vsyncpa [#allocation4], 0  ;;  %s1130_s17 = smov [#allocation5]   ;;  %s966_s21 = scalar_lea.hbm %s1382_s1, 1024 }
   0x5   :  { %s38_s18 = sshll.u32 %s1130_s17, 4  ;;  %p967_p0 = scmp.ne.s32.totalorder %s1382_s1, %s966_s21  ;;  %s39_s18 = int_to_ptr.vmem [resolvable:$true] %s38_s18 }
   0x6   :  { %p970_p1 = scmp.lt.u32.totalorder %s966_s21, %s1382_s1 }
   0x8   :  { %p972_p2 = pnand %p970_p1, %p967_p0 }
   0xa   :  { %975 = shalt.err (!%p972_p2)
}
   0xb   :  { %s976_s26 = scalar_lea.vmem %s39_s18, 1024  ;;  %p981_p4 = scmp.lt.s32.totalorder %s39_s18, %s39_s18 }
   0xc   :  { %p977_p3 = scmp.ne.s32.totalorder %s39_s18, %s976_s26  ;;  %p982_p5 = scmp.lt.s32.totalorder %s976_s26, %s976_s26 }
   0xe   :  { %p983_p6 = por %p982_p5, %p981_p4 }
  0x10   :  { %p984_p7 = pnand %p983_p6, %p977_p3 }
  0x12   :  { %987 = shalt.err (!%p984_p7)
}
  0x13   :  { %s1131_s27 = smov 64   ;;  %s1132_s28 = smov 4  }
  0x14   :  { %44 = dma.hbm_to_vmem [thread:$0]  %s1382_s1, 1024, %s39_s18, [#allocation6], %s1131_s27, %s1131_s27, %s1132_s28  }
  0x15   :  { %s1133_s12 = smov [#allocation8]   ;;  %s1134_s14 = smov [#allocation2]  }
  0x16   :  { %s66_s13 = sshll.u32 %s1133_s12, 4  ;;  %s26_s15 = sshll.u32 %s1134_s14, 4  ;;  %s67_s13 = int_to_ptr.vmem [resolvable:$true] %s66_s13  ;;  %s27_s15 = int_to_ptr.vmem [resolvable:$true] %s26_s15 }
  0x17   :  { %s988_s19 = scalar_lea.hbm %s1386_s5, 1024 }
  0x18   :  { %p989_p8 = scmp.ne.s32.totalorder %s1386_s5, %s988_s19  ;;  %p992_p9 = scmp.lt.u32.totalorder %s988_s19, %s1386_s5 }
  0x1a   :  { %p994_p10 = pnand %p992_p9, %p989_p8 }
  0x1c   :  { %997 = shalt.err (!%p994_p10)
}
  0x1d   :  { %s998_s1 = scalar_lea.vmem %s67_s13, 1024  ;;  %p1003_p12 = scmp.lt.s32.totalorder %s67_s13, %s67_s13 }
  0x1e   :  { %p999_p11 = scmp.ne.s32.totalorder %s67_s13, %s998_s1  ;;  %p1004_p13 = scmp.lt.s32.totalorder %s998_s1, %s998_s1 }
  0x20   :  { %p1005_p0 = por %p1004_p13, %p1003_p12 }
  0x22   :  { %p1006_p1 = pnand %p1005_p0, %p999_p11 }
  0x24   :  { %1009 = shalt.err (!%p1006_p1)
}
  0x25   :  { %72 = dma.hbm_to_vmem [thread:$0]  %s1386_s5, 1024, %s67_s13, [#allocation9], %s1131_s27, %s1131_s27, %s1132_s28  }
  0x26   :  { %s1010_s29 = scalar_lea.hbm %s1381_s0, 256 }
  0x27   :  { %p1011_p2 = scmp.ne.s32.totalorder %s1381_s0, %s1010_s29  ;;  %p1014_p3 = scmp.lt.u32.totalorder %s1010_s29, %s1381_s0 }
  0x29   :  { %p1016_p4 = pnand %p1014_p3, %p1011_p2 }
  0x2b   :  { %1019 = shalt.err (!%p1016_p4)
}
  0x2c   :  { %s1020_s17 = scalar_lea.vmem %s27_s15, 256  ;;  %p1025_p6 = scmp.lt.s32.totalorder %s27_s15, %s27_s15 }
  0x2d   :  { %p1021_p5 = scmp.ne.s32.totalorder %s27_s15, %s1020_s17  ;;  %p1026_p7 = scmp.lt.s32.totalorder %s1020_s17, %s1020_s17 }
  0x2f   :  { %p1027_p8 = por %p1026_p7, %p1025_p6 }
  0x31   :  { %p1028_p9 = pnand %p1027_p8, %p1021_p5 }
  0x33   :  { %1031 = shalt.err (!%p1028_p9)
}
  0x34   :  { %s1135_s5 = smov 128   ;;  %s1136_s13 = smov 8  }
  0x35   :  { %32 = dma.hbm_to_vmem [thread:$0]  %s1381_s0, 256, %s27_s15, [#allocation3], %s1135_s5, %s1135_s5, %s1136_s13  }
  0x36   :  { %s1137_s21 = smov [#allocation7]   ;;  %s1138_s23 = smov [#allocation10]  }
  0x37   :  { %s52_s22 = sshll.u32 %s1137_s21, 4  ;;  %s80_s1 = sshll.u32 %s1138_s23, 4  ;;  %s53_s22 = int_to_ptr.vmem [resolvable:$true] %s52_s22  ;;  %s81_s1 = int_to_ptr.vmem [resolvable:$true] %s80_s1 }
  0x38   :  { %s1032_s25 = scalar_lea.hbm %s1384_s3, 1024 }
  0x39   :  { %p1033_p10 = scmp.ne.s32.totalorder %s1384_s3, %s1032_s25  ;;  %p1036_p11 = scmp.lt.u32.totalorder %s1032_s25, %s1384_s3 }
  0x3b   :  { %p1038_p12 = pnand %p1036_p11, %p1033_p10 }
  0x3d   :  { %1041 = shalt.err (!%p1038_p12)
}
  0x3e   :  { %s1042_s0 = scalar_lea.vmem %s53_s22, 1024  ;;  %p1047_p0 = scmp.lt.s32.totalorder %s53_s22, %s53_s22 }
  0x3f   :  { %p1043_p13 = scmp.ne.s32.totalorder %s53_s22, %s1042_s0  ;;  %p1048_p1 = scmp.lt.s32.totalorder %s1042_s0, %s1042_s0 }
  0x41   :  { %p1049_p2 = por %p1048_p1, %p1047_p0 }
  0x43   :  { %p1050_p3 = pnand %p1049_p2, %p1043_p13 }
  0x45   :  { %1053 = shalt.err (!%p1050_p3)
}
  0x46   :  { %58 = dma.hbm_to_vmem [thread:$0]  %s1384_s3, 1024, %s53_s22, [#allocation6], %s1131_s27, %s1131_s27, %s1132_s28  }
  0x47   :  { %s1054_s19 = scalar_lea.hbm %s1388_s7, 1024 }
  0x48   :  { %p1055_p4 = scmp.ne.s32.totalorder %s1388_s7, %s1054_s19  ;;  %p1058_p5 = scmp.lt.u32.totalorder %s1054_s19, %s1388_s7 }
  0x4a   :  { %p1060_p6 = pnand %p1058_p5, %p1055_p4 }
  0x4c   :  { %1063 = shalt.err (!%p1060_p6)
}
  0x4d   :  { %s1064_s24 = scalar_lea.vmem %s81_s1, 1024  ;;  %p1069_p8 = scmp.lt.s32.totalorder %s81_s1, %s81_s1 }
  0x4e   :  { %p1065_p7 = scmp.ne.s32.totalorder %s81_s1, %s1064_s24  ;;  %p1070_p9 = scmp.lt.s32.totalorder %s1064_s24, %s1064_s24 }
  0x50   :  { %p1071_p10 = por %p1070_p9, %p1069_p8 }
  0x52   :  { %p1072_p11 = pnand %p1071_p10, %p1065_p7 }
  0x54   :  { %1075 = shalt.err (!%p1072_p11)
}
  0x55   :  { %86 = dma.hbm_to_vmem [thread:$0]  %s1388_s7, 1024, %s81_s1, [#allocation9], %s1131_s27, %s1131_s27, %s1132_s28  }
  0x56   :  { %s1139_s25 = smov [#allocation11]   ;;  %s1076_s12 = scalar_lea.hbm %s1390_s9, 1024 }
  0x57   :  { %s94_s26 = sshll.u32 %s1139_s25, 4  ;;  %p1077_p12 = scmp.ne.s32.totalorder %s1390_s9, %s1076_s12  ;;  %s95_s26 = int_to_ptr.vmem [resolvable:$true] %s94_s26 }
  0x58   :  { %p1080_p13 = scmp.lt.u32.totalorder %s1076_s12, %s1390_s9 }
  0x5a   :  { %p1082_p0 = pnand %p1080_p13, %p1077_p12 }
  0x5c   :  { %1085 = shalt.err (!%p1082_p0)
}
  0x5d   :  { %s1086_s17 = scalar_lea.vmem %s95_s26, 1024  ;;  %p1091_p2 = scmp.lt.s32.totalorder %s95_s26, %s95_s26 }
  0x5e   :  { %p1087_p1 = scmp.ne.s32.totalorder %s95_s26, %s1086_s17  ;;  %p1092_p3 = scmp.lt.s32.totalorder %s1086_s17, %s1086_s17 }
  0x60   :  { %p1093_p4 = por %p1092_p3, %p1091_p2 }
  0x62   :  { %p1094_p5 = pnand %p1093_p4, %p1087_p1 }
  0x64   :  { %1097 = shalt.err (!%p1094_p5)
}
  0x65   :  { %100 = dma.hbm_to_vmem [thread:$0]  %s1390_s9, 1024, %s95_s26, [#allocation12], %s1131_s27, %s1131_s27, %s1132_s28  }
  0x66   :  { %1120 = dma.done.wait [#allocation3], 256  }
  0x67   :  { %1121 = vsyncadd [#allocation3], 4294967040 }
  0x68   :  { %1122 = dma.done.wait [#allocation6], 2048  }
  0x69   :  { %1123 = vsyncadd [#allocation6], 4294965248 }
  0x6a   :  { %1124 = dma.done.wait [#allocation9], 2048  }
  0x6b   :  { %1125 = vsyncadd [#allocation9], 4294965248 }
  0x6c   :  { %1126 = dma.done.wait [#allocation12], 1024  }
  0x6d   :  { %1127 = vsyncadd [#allocation12], 4294966272  ;;  %v1140_v0 = vmov 0.0   ;;  %vm1141_vm0 = vmmov 0   ;;  %v926_v1 = vld [vmem:[#allocation5] sm:$0xff]   ;;  %v927_v2 = vld [vmem:[#allocation5 + $0x8] sm:$0xff]  }
  0x6e   :  { %813 = vmatprep.subr.bf16.mxu0 %v1140_v0  ;;  %829 = vmatprep.mubr.msk.bf16.mxu0 %vm1141_vm0, %v1140_v0  ;;  %v928_v3 = vld [vmem:[#allocation5 + $0x10] sm:$0xff]   ;;  %v934_v4 = vld [vmem:[#allocation7] sm:$0xff]   ;;  %v929_v5 = vld [vmem:[#allocation5 + $0x18] sm:$0xff]   ;;  %s1142_s18 = smov [#allocation13]  }
  0x6f   :  { %833 = vmatprep.subr.bf16.mxu1 %v1140_v0  ;;  %849 = vmatprep.mubr.msk.bf16.mxu1 %vm1141_vm0, %v1140_v0  ;;  %v935_v6 = vld [vmem:[#allocation7 + $0x8] sm:$0xff]   ;;  %v930_v7 = vld [vmem:[#allocation5 + $0x20] sm:$0xff]   ;;  %v936_v8 = vld [vmem:[#allocation7 + $0x10] sm:$0xff]   ;;  %s708_s24 = sshll.u32 %s1142_s18, 4  ;;  %s709_s24 = int_to_ptr.vmem [resolvable:$true] %s708_s24 }
  0x70   :  { %814 = vmatpush3.bf16.msra.mxu0 %v926_v1  ;;  %834 = vmatpush3.bf16.msra.mxu1 %v934_v4  ;;  %v931_v9 = vld [vmem:[#allocation5 + $0x28] sm:$0xff]   ;;  %v937_v10 = vld [vmem:[#allocation7 + $0x18] sm:$0xff]   ;;  %v932_v11 = vld [vmem:[#allocation5 + $0x30] sm:$0xff]   ;;  %p1103_p7 = scmp.lt.s32.totalorder %s709_s24, %s709_s24 }
  0x71   :  { %815 = vmatprep.subr.bf16.mxu0 %v1140_v0  ;;  %835 = vmatprep.subr.bf16.mxu1 %v1140_v0  ;;  %v938_v12 = vld [vmem:[#allocation7 + $0x20] sm:$0xff]   ;;  %v933_v13 = vld [vmem:[#allocation5 + $0x38] sm:$0xff]   ;;  %v1308_v14 = vld [vmem:[#allocation2] sm:$0xff] }
  0x72   :  { %v1310_v15 = vld [vmem:[#allocation2 + $0x8] sm:$0xff]  ;;  %v939_v16 = vld [vmem:[#allocation7 + $0x28] sm:$0xff]   ;;  %v940_v18 = vld [vmem:[#allocation7 + $0x30] sm:$0xff]  }
  0x73   :  { %v124_v17 = vpack.c.bf16 %v1310_v15, %v1308_v14  ;;  %v941_v19 = vld [vmem:[#allocation7 + $0x38] sm:$0xff]   ;;  %v942_v20 = vld [vmem:[#allocation8] sm:$0xff]   ;;  %v943_v21 = vld [vmem:[#allocation8 + $0x8] sm:$0xff]  }
  0x74   :  { %816 = vmatpush3.bf16.msra.mxu0 %v927_v2  ;;  %836 = vmatpush3.bf16.msra.mxu1 %v935_v6  ;;  %v944_v22 = vld [vmem:[#allocation8 + $0x10] sm:$0xff]   ;;  %v945_v23 = vld [vmem:[#allocation8 + $0x18] sm:$0xff]   ;;  %v946_v24 = vld [vmem:[#allocation8 + $0x20] sm:$0xff]  }
  0x75   :  { %817 = vmatprep.subr.bf16.mxu0 %v1140_v0  ;;  %837 = vmatprep.subr.bf16.mxu1 %v1140_v0  ;;  %v723_v25 = vld [vmem:[%s1383_s2] ss:$0 sm:$0xff]  ;;  %v947_v35 = vld [vmem:[#allocation8 + $0x28] sm:$0xff]   ;;  %v949_v37 = vld [vmem:[#allocation8 + $0x38] sm:$0xff]  }
  0x76   :  { %v948_v36 = vld [vmem:[#allocation8 + $0x30] sm:$0xff]   ;;  %v950_v38 = vld [vmem:[#allocation10] sm:$0xff]   ;;  %v951_v39 = vld [vmem:[#allocation10 + $0x8] sm:$0xff]  }
  0x77   :  { %v952_v40 = vld [vmem:[#allocation10 + $0x10] sm:$0xff]   ;;  %v953_v41 = vld [vmem:[#allocation10 + $0x18] sm:$0xff]   ;;  %v954_v42 = vld [vmem:[#allocation10 + $0x20] sm:$0xff]  }
  0x78   :  { %818 = vmatpush3.bf16.msra.mxu0 %v928_v3  ;;  %838 = vmatpush3.bf16.msra.mxu1 %v936_v8  ;;  %v955_v43 = vld [vmem:[#allocation10 + $0x28] sm:$0xff]   ;;  %v732_v44 = vld [vmem:[%s1385_s4] ss:$0 sm:$0xff]  ;;  %v957_v57 = vld [vmem:[#allocation10 + $0x38] sm:$0xff]  }
  0x79   :  { %819 = vmatprep.subr.bf16.mxu0 %v1140_v0  ;;  %839 = vmatprep.subr.bf16.mxu1 %v1140_v0  ;;  %v956_v56 = vld [vmem:[#allocation10 + $0x30] sm:$0xff]   ;;  %v958_v58 = vld [vmem:[#allocation11] sm:$0xff]   ;;  %v959_v59 = vld [vmem:[#allocation11 + $0x8] sm:$0xff]  }
  0x7a   :  { %v960_v60 = vld [vmem:[#allocation11 + $0x10] sm:$0xff]   ;;  %v961_v61 = vld [vmem:[#allocation11 + $0x18] sm:$0xff]   ;;  %v962_v62 = vld [vmem:[#allocation11 + $0x20] sm:$0xff]  }
  0x7b   :  { %v741_v63 = vld [vmem:[%s1387_s6] ss:$0 sm:$0xff] }
  0x7c   :  { %820 = vmatpush3.bf16.msra.mxu0 %v929_v5  ;;  %840 = vmatpush3.bf16.msra.mxu1 %v937_v10  ;;  %v963_v10 = vld [vmem:[#allocation11 + $0x28] sm:$0xff]  }
  0x7d   :  { %821 = vmatprep.subr.bf16.mxu0 %v1140_v0  ;;  %841 = vmatprep.subr.bf16.mxu1 %v1140_v0 }
  0x80   :  { %822 = vmatpush3.bf16.msra.mxu0 %v930_v7  ;;  %842 = vmatpush3.bf16.msra.mxu1 %v938_v12  ;;  %v965_v12 = vld [vmem:[#allocation11 + $0x38] sm:$0xff]  }
  0x81   :  { %823 = vmatprep.subr.bf16.mxu0 %v1140_v0  ;;  %843 = vmatprep.subr.bf16.mxu1 %v1140_v0 }
  0x84   :  { %824 = vmatpush3.bf16.msra.mxu0 %v931_v9  ;;  %844 = vmatpush3.bf16.msra.mxu1 %v939_v16 }
  0x85   :  { %825 = vmatprep.subr.bf16.mxu0 %v1140_v0  ;;  %845 = vmatprep.subr.bf16.mxu1 %v1140_v0 }
  0x88   :  { %826 = vmatpush3.bf16.msra.mxu0 %v932_v11  ;;  %846 = vmatpush3.bf16.msra.mxu1 %v940_v18  ;;  %v964_v11 = vld [vmem:[#allocation11 + $0x30] sm:$0xff]  }
  0x89   :  { %827 = vmatprep.subr.bf16.mxu0 %v1140_v0  ;;  %847 = vmatprep.subr.bf16.mxu1 %v1140_v0 }
  0x8c   :  { %828 = vmatpush3.bf16.msra.mxu0 %v933_v13  ;;  %848 = vmatpush3.bf16.msra.mxu1 %v941_v19  ;;  %v750_v13 = vld [vmem:[%s1389_s8] ss:$0 sm:$0xff]  ;;  %s1098_s8 = scalar_lea.vmem %s709_s24, 256 }
  0x8d   :  { %853 = vmatprep.subr.bf16.mxu0 %v1140_v0  ;;  %873 = vmatprep.subr.bf16.mxu1 %v1140_v0  ;;  %p1099_p6 = scmp.ne.s32.totalorder %s709_s24, %s1098_s8  ;;  %p1104_p8 = scmp.lt.s32.totalorder %s1098_s8, %s1098_s8 }
  0x8f   :  { %830 = vmatmul.mubr.bf16.vlgmr.msra.gmra.mrb[0].mxu0 %v124_v17  ;;  %p1105_p9 = por %p1104_p8, %p1103_p7 }
  0x90   :  { %869 = vmatprep.mubr.msk.bf16.mxu0 %vm1141_vm0, %v1140_v0  ;;  %854 = vmatpush3.bf16.msra.mxu0 %v942_v20 }
  0x91   :  { %855 = vmatprep.subr.bf16.mxu0 %v1140_v0  ;;  %p1106_p10 = pnand %p1105_p9, %p1099_p6 }
  0x94   :  { %856 = vmatpush3.bf16.msra.mxu0 %v943_v21 }
  0x95   :  { %857 = vmatprep.subr.bf16.mxu0 %v1140_v0 }
  0x98   :  { %858 = vmatpush3.bf16.msra.mxu0 %v944_v22 }
  0x99   :  { %859 = vmatprep.subr.bf16.mxu0 %v1140_v0 }
  0x9c   :  { %860 = vmatpush3.bf16.msra.mxu0 %v945_v23 }
  0x9d   :  { %861 = vmatprep.subr.bf16.mxu0 %v1140_v0 }
  0xa0   :  { %862 = vmatpush3.bf16.msra.mxu0 %v946_v24 }
  0xa1   :  { %863 = vmatprep.subr.bf16.mxu0 %v1140_v0 }
  0xa4   :  { %864 = vmatpush3.bf16.msra.mxu0 %v947_v35 }
  0xa5   :  { %865 = vmatprep.subr.bf16.mxu0 %v1140_v0 }
  0xa8   :  { %866 = vmatpush3.bf16.msra.mxu0 %v948_v36 }
  0xa9   :  { %867 = vmatprep.subr.bf16.mxu0 %v1140_v0 }
  0xac   :  { %868 = vmatpush3.bf16.msra.mxu0 %v949_v37 }
  0xad   :  { %893 = vmatprep.subr.bf16.mxu0 %v1140_v0 }
 0x162   :  { %v230_v26 = vpop.f32.mrb[0].mxu0 }
 0x163   :  { %v231_v27 = vadd.f32 %v723_v25, %v230_v26  ;;  %v831_v28 = vpop.f32.mrb[1].mxu0 }
 0x164   :  { %v233_v29 = vpop.f32.mrb[2].mxu0 }
 0x165   :  { %v234_v30 = vadd.f32 %v723_v25, %v233_v29  ;;  %v832_v31 = vpop.f32.mrb[3].mxu0  ;;  %v237_v32 = vmax.f32 %v231_v27, 0.0 }
 0x167   :  { %v238_v33 = vmax.f32 %v234_v30, 0.0 }
 0x169   :  { %v239_v34 = vpack.c.bf16 %v238_v33, %v237_v32 }
 0x16b   :  { %850 = vmatmul.mubr.bf16.vlgmr.msra.gmra.mrb[0].mxu1 %v239_v34 }
 0x16c   :  { %889 = vmatprep.mubr.msk.bf16.mxu1 %vm1141_vm0, %v1140_v0  ;;  %874 = vmatpush3.bf16.msra.mxu1 %v950_v38 }
 0x16d   :  { %875 = vmatprep.subr.bf16.mxu1 %v1140_v0 }
 0x170   :  { %876 = vmatpush3.bf16.msra.mxu1 %v951_v39 }
 0x171   :  { %877 = vmatprep.subr.bf16.mxu1 %v1140_v0 }
 0x174   :  { %878 = vmatpush3.bf16.msra.mxu1 %v952_v40 }
 0x175   :  { %879 = vmatprep.subr.bf16.mxu1 %v1140_v0 }
 0x178   :  { %880 = vmatpush3.bf16.msra.mxu1 %v953_v41 }
 0x179   :  { %881 = vmatprep.subr.bf16.mxu1 %v1140_v0 }
 0x17c   :  { %882 = vmatpush3.bf16.msra.mxu1 %v954_v42 }
 0x17d   :  { %883 = vmatprep.subr.bf16.mxu1 %v1140_v0 }
 0x180   :  { %884 = vmatpush3.bf16.msra.mxu1 %v955_v43 }
 0x181   :  { %885 = vmatprep.subr.bf16.mxu1 %v1140_v0 }
 0x184   :  { %886 = vmatpush3.bf16.msra.mxu1 %v956_v56 }
 0x185   :  { %887 = vmatprep.subr.bf16.mxu1 %v1140_v0 }
 0x188   :  { %888 = vmatpush3.bf16.msra.mxu1 %v957_v57 }
 0x23e   :  { %v345_v45 = vpop.f32.mrb[0].mxu1 }
 0x23f   :  { %v346_v46 = vadd.f32 %v732_v44, %v345_v45  ;;  %v851_v47 = vpop.f32.mrb[1].mxu1 }
 0x240   :  { %v348_v48 = vpop.f32.mrb[2].mxu1 }
 0x241   :  { %v352_v49 = vadd.f32 %v346_v46, %v231_v27  ;;  %v349_v50 = vadd.f32 %v732_v44, %v348_v48  ;;  %v852_v51 = vpop.f32.mrb[3].mxu1 }
 0x243   :  { %v353_v52 = vadd.f32 %v349_v50, %v234_v30  ;;  %v354_v53 = vadd.f32 %v352_v49, %v1308_v14 }
 0x245   :  { %v355_v54 = vadd.f32 %v353_v52, %v1310_v15 }
 0x247   :  { %v356_v55 = vpack.c.bf16 %v355_v54, %v354_v53 }
 0x249   :  { %870 = vmatmul.mubr.bf16.vlgmr.msra.gmra.mrb[4].mxu0 %v356_v55 }
 0x24a   :  { %909 = vmatprep.mubr.msk.bf16.mxu0 %vm1141_vm0, %v1140_v0  ;;  %894 = vmatpush3.bf16.msra.mxu0 %v958_v58 }
 0x24b   :  { %895 = vmatprep.subr.bf16.mxu0 %v1140_v0 }
 0x24e   :  { %896 = vmatpush3.bf16.msra.mxu0 %v959_v59 }
 0x24f   :  { %897 = vmatprep.subr.bf16.mxu0 %v1140_v0 }
 0x252   :  { %898 = vmatpush3.bf16.msra.mxu0 %v960_v60 }
 0x253   :  { %899 = vmatprep.subr.bf16.mxu0 %v1140_v0 }
 0x256   :  { %900 = vmatpush3.bf16.msra.mxu0 %v961_v61 }
 0x257   :  { %901 = vmatprep.subr.bf16.mxu0 %v1140_v0 }
 0x25a   :  { %902 = vmatpush3.bf16.msra.mxu0 %v962_v62 }
 0x25b   :  { %903 = vmatprep.subr.bf16.mxu0 %v1140_v0 }
 0x25e   :  { %904 = vmatpush3.bf16.msra.mxu0 %v963_v10 }
 0x25f   :  { %905 = vmatprep.subr.bf16.mxu0 %v1140_v0 }
 0x262   :  { %906 = vmatpush3.bf16.msra.mxu0 %v964_v11 }
 0x263   :  { %907 = vmatprep.subr.bf16.mxu0 %v1140_v0  ;;  %v759_v0 = vld [vmem:[%s1391_s10] ss:$0 sm:$0xff] }
 0x266   :  { %908 = vmatpush3.bf16.msra.mxu0 %v965_v12 }
 0x31c   :  { %v462_v1 = vpop.f32.mrb[4].mxu0 }
 0x31d   :  { %v463_v2 = vadd.f32 %v741_v63, %v462_v1  ;;  %v871_v3 = vpop.f32.mrb[5].mxu0 }
 0x31e   :  { %v465_v4 = vpop.f32.mrb[6].mxu0 }
 0x31f   :  { %v466_v5 = vadd.f32 %v741_v63, %v465_v4  ;;  %v872_v6 = vpop.f32.mrb[7].mxu0  ;;  %v469_v7 = vmax.f32 %v463_v2, 0.0 }
 0x321   :  { %v470_v8 = vmax.f32 %v466_v5, 0.0 }
 0x323   :  { %v471_v9 = vpack.c.bf16 %v470_v8, %v469_v7 }
 0x325   :  { %890 = vmatmul.mubr.bf16.vlgmr.msra.gmra.mrb[4].mxu1 %v471_v9 }
 0x3f8   :  { %v577_v14 = vpop.f32.mrb[4].mxu1 }
 0x3f9   :  { %v578_v15 = vadd.f32 %v750_v13, %v577_v14  ;;  %v891_v16 = vpop.f32.mrb[5].mxu1 }
 0x3fa   :  { %v580_v17 = vpop.f32.mrb[6].mxu1 }
 0x3fb   :  { %v584_v18 = vadd.f32 %v578_v15, %v463_v2  ;;  %v581_v19 = vadd.f32 %v750_v13, %v580_v17  ;;  %v892_v20 = vpop.f32.mrb[7].mxu1 }
 0x3fd   :  { %v585_v21 = vadd.f32 %v581_v19, %v466_v5  ;;  %v586_v22 = vadd.f32 %v584_v18, %v354_v53 }
 0x3ff   :  { %v587_v23 = vadd.f32 %v585_v21, %v355_v54 }
 0x401   :  { %v588_v24 = vpack.c.bf16 %v587_v23, %v586_v22 }
 0x403   :  { %910 = vmatmul.mubr.bf16.vlgmr.msra.gmra.mrb[8].mxu0 %v588_v24 }
 0x4d6   :  { %v694_v25 = vpop.f32.mrb[8].mxu0 }
 0x4d7   :  { %v695_v26 = vadd.f32 %v759_v0, %v694_v25  ;;  %v911_v27 = vpop.f32.mrb[9].mxu0 }
 0x4d8   :  { %v697_v28 = vpop.f32.mrb[10].mxu0 }
 0x4d9   :  { %701 = vst [vmem:[#allocation13] sm:$0xff] %v695_v26  ;;  %v698_v29 = vadd.f32 %v759_v0, %v697_v28  ;;  %v912_v30 = vpop.f32.mrb[11].mxu0 }
 0x4db   :  { %702 = vst [vmem:[#allocation13 + $0x8] sm:$0xff] %v698_v29 }
 0x4dc   :  { %1109 = shalt.err (!%p1106_p10)
}
 0x4dd   :  { %s1110_s22 = scalar_lea.hbm %s1392_s11, 256 }
 0x4de   :  { %p1111_p11 = scmp.ne.s32.totalorder %s1392_s11, %s1110_s22  ;;  %p1114_p12 = scmp.lt.u32.totalorder %s1110_s22, %s1392_s11 }
 0x4e0   :  { %p1116_p13 = pnand %p1114_p12, %p1111_p11 }
 0x4e2   :  { %1119 = shalt.err (!%p1116_p13)
}
 0x4e3   :  { %714 = dma.vmem_to_hbm [thread:$0]  %s709_s24, 256, %s1392_s11, [#allocation4], %s1135_s5, %s1135_s5, %s1136_s13  }
 0x4e4   :  { %1128 = dma.done.wait [#allocation4], 256  }
 0x4e5   :  { %1129 = vsyncadd [#allocation4], 4294967040 }
 0x4e6   :  { %718 = vsyncpa [#allocation3], 1 }
 0x4e7   :  { %719 = vsyncpa [#allocation6], 1 }
 0x4e8   :  { %720 = vsyncpa [#allocation9], 1 }
 0x4e9   :  { %721 = vsyncpa [#allocation12], 1 }
 0x4ea   :  { %722 = vsyncpa [#allocation4], 1 }

</bundles_post_ra>
